<compile_context>
chip_gen: v6e
topology: v6e:2x2x1
jax: 0.10.0
libtpu: 0.0.40
codegen_flags: <defaults>
</compile_context>

<pallas_src>
from functools import partial

import jax
import jax.numpy as jnp
from jax.experimental import pallas as pl
from jax.experimental.pallas import tpu as pltpu

INPUT_SIZE = 130
HIDDEN = 32
OUT1 = 10
OUT2 = 7


def lstm_head_kernel(x_ref,
                     w_ih0_ref, b0_ref,
                     w_stack_ref, w_hh1_ref, b1_ref,
                     w_head_ref, b_head_ref,
                     out_ref, pre0_ref, *, seq_len, batch):
    """2-layer LSTM over time + fused linear head.

    x_ref      : (T*B, D)    time-major, flattened over (t, b), B padded to 8
    w_ih0_ref  : (D, 4H)     layer-0 input weights (transposed)
    b0_ref     : (1, 4H)     layer-0 combined bias (b_ih + b_hh)
    w_stack_ref: (H, 8H)     [W_ih1^T | W_hh0^T]  (both consumers of h0)
    w_hh1_ref  : (H, 4H)     layer-1 hidden weights (transposed)
    b1_ref     : (1, 4H)     layer-1 combined bias
    w_head_ref : (H, 7)      fused Linear(32,10) @ Linear(10,7) weights
    b_head_ref : (1, 7)      fused head bias
    out_ref    : (B, 7)
    pre0_ref   : (T*B, 4H)   VMEM scratch for the hoisted input projection
    """
    T, B, H = seq_len, batch, HIDDEN

    # ---- Hoisted layer-0 input projection for ALL timesteps (one matmul),
    # ---- parked in VMEM so it does not occupy vregs across the unrolled loop.
    pre0_ref[...] = (jnp.dot(x_ref[...], w_ih0_ref[...],
                             preferred_element_type=jnp.float32)
                     + b0_ref[...])                     # (T*B, 4H)

    w_stack = w_stack_ref[...]                          # (H, 8H)
    w_hh1 = w_hh1_ref[...]                              # (H, 4H)
    b1 = jnp.broadcast_to(b1_ref[...], (B, 4 * H))      # hoisted broadcast

    def gates_to_hc(gates, c):
        # Two full-width activations (EUP) instead of four narrow 32-lane ones.
        sig = jax.nn.sigmoid(gates)                     # (B, 4H)
        th = jnp.tanh(gates)                            # (B, 4H)
        i = sig[:, 0 * H:1 * H]                         # PyTorch order i,f,g,o
        f = sig[:, 1 * H:2 * H]
        g = th[:, 2 * H:3 * H]
        o = sig[:, 3 * H:4 * H]
        c_new = f * c + i * g
        h_new = o * jnp.tanh(c_new)
        return h_new, c_new

    zeros = jnp.zeros((B, H), jnp.float32)

    # ---- Peeled t = 0: h0 = c0 = h1 = c1 = 0, so no recurrent matmuls. ----
    h0, c0 = gates_to_hc(pre0_ref[0:B, :], zeros)
    stk = jnp.dot(h0, w_stack, preferred_element_type=jnp.float32)   # (B, 8H)
    h1, c1 = gates_to_hc(stk[:, :4 * H] + b1, zeros)
    rec0 = stk[:, 4 * H:]            # layer-0 recurrent pre-gates for t = 1

    # ---- Fully-unrolled time loop (T is a Python constant). ----
    last = T - 1
    for t in range(1, T):
        # Layer-1 recurrent matmul depends only on h1(t-1): off the h0 chain.
        g1_h1 = jnp.dot(h1, w_hh1, preferred_element_type=jnp.float32)

        # Layer 0: recurrent pre-gates came from the previous stacked matmul;
        # the input part is one aligned (8, 128) VMEM load.
        h0, c0 = gates_to_hc(rec0 + pre0_ref[t * B:(t + 1) * B, :], c0)

        if t < last:
            # One stacked matmul: [layer-1 h0-part | layer-0 pre-gates(t+1)].
            stk = jnp.dot(h0, w_stack, preferred_element_type=jnp.float32)
            pre1_h0 = stk[:, :4 * H]
            rec0 = stk[:, 4 * H:]
        else:
            # Final step: layer-0's next-step recurrence is never consumed.
            pre1_h0 = jnp.dot(h0, w_stack[:, :4 * H],
                              preferred_element_type=jnp.float32)

        h1, c1 = gates_to_hc(pre1_h0 + g1_h1 + b1, c1)

    # Algebraically fused heads: Linear(32,10) then Linear(10,7).
    out_ref[...] = (jnp.dot(h1, w_head_ref[...],
                            preferred_element_type=jnp.float32)
                    + b_head_ref[...]).astype(out_ref.dtype)


def init_params(key):
    """Deterministic parameter init mimicking the module's shapes (raw form)."""
    ks = jax.random.split(key, 12)
    H = HIDDEN
    k_l = 1.0 / jnp.sqrt(H)

    def u(k, shape, bound):
        return jax.random.uniform(k, shape, jnp.float32, -bound, bound)

    # LSTM layer 0 (input_size=130)
    w_ih0 = u(ks[0], (4 * H, INPUT_SIZE), k_l)
    w_hh0 = u(ks[1], (4 * H, H), k_l)
    b_ih0 = u(ks[2], (4 * H,), k_l)
    b_hh0 = u(ks[3], (4 * H,), k_l)
    # LSTM layer 1 (input_size=H)
    w_ih1 = u(ks[4], (4 * H, H), k_l)
    w_hh1 = u(ks[5], (4 * H, H), k_l)
    b_ih1 = u(ks[6], (4 * H,), k_l)
    b_hh1 = u(ks[7], (4 * H,), k_l)
    # out1: Linear(32, 10)
    k1 = 1.0 / jnp.sqrt(H)
    w_o1 = u(ks[8], (OUT1, H), k1)
    b_o1 = u(ks[9], (OUT1,), k1)
    # out2: Linear(10, 7)
    k2 = 1.0 / jnp.sqrt(OUT1)
    w_o2 = u(ks[10], (OUT2, OUT1), k2)
    b_o2 = u(ks[11], (OUT2,), k2)

    return dict(
        w_ih0_t=w_ih0.T, w_hh0_t=w_hh0.T, b0=(b_ih0 + b_hh0)[None, :],
        w_ih1_t=w_ih1.T, w_hh1_t=w_hh1.T, b1=(b_ih1 + b_hh1)[None, :],
        w_o1_t=w_o1.T, b_o1=b_o1[None, :],
        w_o2_t=w_o2.T, b_o2=b_o2[None, :],
    )


def pack_params(p):
    """Build the kernel operands: stacked h0-consumer weights and fused head."""
    return dict(
        w_ih0_t=p["w_ih0_t"],                                          # (D, 4H)
        b0=p["b0"],                                                    # (1, 4H)
        # cols [:4H] -> layer-1 input part, cols [4H:] -> layer-0 recurrence
        w_stack=jnp.concatenate([p["w_ih1_t"], p["w_hh0_t"]], axis=1),  # (H, 8H)
        w_hh1_t=p["w_hh1_t"],                                          # (H, 4H)
        b1=p["b1"],                                                    # (1, 4H)
        w_head=p["w_o1_t"] @ p["w_o2_t"],                              # (H, 7)
        b_head=p["b_o1"] @ p["w_o2_t"] + p["b_o2"],                    # (1, 7)
    )


def gru_forward(x, packed):
    """x: (B, T, 130) batch-first (matches PyTorch batch_first=True)."""
    B, T, D = x.shape
    # Pad batch to a multiple of 8 so every per-step tile is vreg-aligned.
    Bp = ((B + 7) // 8) * 8
    x_p = jnp.zeros((Bp, T, D), jnp.float32).at[:B].set(x.astype(jnp.float32))
    # Layout plumbing only: time-major and flattened over (t, b).
    x2d = jnp.transpose(x_p, (1, 0, 2)).reshape(T * Bp, D)

    kernel = partial(lstm_head_kernel, seq_len=T, batch=Bp)
    out = pl.pallas_call(
        kernel,
        out_shape=jax.ShapeDtypeStruct((Bp, OUT2), jnp.float32),
        scratch_shapes=[pltpu.VMEM((T * Bp, 4 * HIDDEN), jnp.float32)],
        cost_estimate=pl.CostEstimate(
            flops=4_000_000, transcendentals=40_000, bytes_accessed=200_000),
    )(x2d,
      packed["w_ih0_t"], packed["b0"],
      packed["w_stack"], packed["w_hh1_t"], packed["b1"],
      packed["w_head"], packed["b_head"])
    return out[:B]


def gru_forward_ref(x, p):
    """Pure-JAX reference with the original (unfused) semantics."""
    B, T, D = x.shape
    H = HIDDEN

    def cell(x_t, h, c, w_ih, w_hh, b):
        gates = x_t @ w_ih + h @ w_hh + b
        i = jax.nn.sigmoid(gates[:, 0 * H:1 * H])
        f = jax.nn.sigmoid(gates[:, 1 * H:2 * H])
        g = jnp.tanh(gates[:, 2 * H:3 * H])
        o = jax.nn.sigmoid(gates[:, 3 * H:4 * H])
        c_new = f * c + i * g
        return o * jnp.tanh(c_new), c_new

    h0 = c0 = h1 = c1 = jnp.zeros((B, H), jnp.float32)
    for t in range(T):
        h0, c0 = cell(x[:, t, :], h0, c0, p["w_ih0_t"], p["w_hh0_t"], p["b0"])
        h1, c1 = cell(h0, h1, c1, p["w_ih1_t"], p["w_hh1_t"], p["b1"])
    y = h1 @ p["w_o1_t"] + p["b_o1"]
    return y @ p["w_o2_t"] + p["b_o2"]


if __name__ == "__main__":
    key = jax.random.PRNGKey(0)
    k_x, k_p = jax.random.split(key)

    B, T = 2, 8
    x = jax.random.normal(k_x, (B, T, INPUT_SIZE), jnp.float32)
    params = init_params(k_p)
    packed = pack_params(params)

    out = gru_forward(x, packed)
    out = jax.block_until_ready(out)

    ref = gru_forward_ref(x, params)
    assert out.shape == (B, OUT2)
    assert jnp.allclose(out, ref, atol=1e-4, rtol=1e-4)

    print("KERNEL_OK")
</pallas_src>

<mosaic_0001>
module attributes {stable_mosaic.version = 11 : i64} {
  func.func @lstm_head_kernel(%arg0: memref<64x130xf32, #tpu.memory_space<vmem>>, %arg1: memref<130x128xf32, #tpu.memory_space<vmem>>, %arg2: memref<1x128xf32, #tpu.memory_space<vmem>>, %arg3: memref<32x256xf32, #tpu.memory_space<vmem>>, %arg4: memref<32x128xf32, #tpu.memory_space<vmem>>, %arg5: memref<1x128xf32, #tpu.memory_space<vmem>>, %arg6: memref<32x7xf32, #tpu.memory_space<vmem>>, %arg7: memref<1x7xf32, #tpu.memory_space<vmem>>, %arg8: memref<8x7xf32, #tpu.memory_space<vmem>>, %arg9: memref<64x128xf32, #tpu.memory_space<vmem>>) attributes {dimension_semantics = [], scalar_prefetch = 0 : i64, scratch_operands = 1 : i64, tpu.core_type = #tpu.core_type<tc>} {
    %c0 = arith.constant 0 : index
    %c0_0 = arith.constant 0 : index
    %0 = vector.load %arg0[%c0, %c0_0] : memref<64x130xf32, #tpu.memory_space<vmem>>, vector<64x130xf32>
    %c0_1 = arith.constant 0 : index
    %c0_2 = arith.constant 0 : index
    %1 = vector.load %arg1[%c0_1, %c0_2] : memref<130x128xf32, #tpu.memory_space<vmem>>, vector<130x128xf32>
    %cst = arith.constant dense<0.000000e+00> : vector<64x128xf32>
    %2 = tpu.matmul %0, %1, %cst {dimension_numbers = #tpu.dot_dimension_numbers<[1], [0], [0], [1], [0, 0, 1, 1], [], []>} : vector<64x130xf32>, vector<130x128xf32>, vector<64x128xf32> -> vector<64x128xf32>
    %c0_3 = arith.constant 0 : index
    %c0_4 = arith.constant 0 : index
    %3 = vector.load %arg2[%c0_3, %c0_4] : memref<1x128xf32, #tpu.memory_space<vmem>>, vector<1x128xf32>
    %4 = vector.broadcast %3 : vector<1x128xf32> to vector<64x128xf32>
    %5 = arith.addf %2, %4 : vector<64x128xf32>
    %c0_5 = arith.constant 0 : index
    %c0_6 = arith.constant 0 : index
    %6 = vector.load %arg9[%c0_5, %c0_6] : memref<64x128xf32, #tpu.memory_space<vmem>>, vector<64x128xf32>
    tpu.vector_store %arg9[%c0_5, %c0_6], %5 {strides = array<i32>} : memref<64x128xf32, #tpu.memory_space<vmem>>, vector<64x128xf32>,
    %c0_7 = arith.constant 0 : index
    %c0_8 = arith.constant 0 : index
    %7 = vector.load %arg3[%c0_7, %c0_8] : memref<32x256xf32, #tpu.memory_space<vmem>>, vector<32x256xf32>
    %c0_9 = arith.constant 0 : index
    %c0_10 = arith.constant 0 : index
    %8 = vector.load %arg4[%c0_9, %c0_10] : memref<32x128xf32, #tpu.memory_space<vmem>>, vector<32x128xf32>
    %c0_11 = arith.constant 0 : index
    %c0_12 = arith.constant 0 : index
    %9 = vector.load %arg5[%c0_11, %c0_12] : memref<1x128xf32, #tpu.memory_space<vmem>>, vector<1x128xf32>
    %10 = vector.shape_cast %9 : vector<1x128xf32> to vector<1x128xf32>
    %11 = vector.broadcast %10 : vector<1x128xf32> to vector<8x128xf32>
    %cst_13 = arith.constant 0.000000e+00 : f32
    %12 = vector.broadcast %cst_13 : f32 to vector<8x32xf32>
    %c0_14 = arith.constant 0 : index
    %c0_15 = arith.constant 0 : index
    %13 = vector.load %arg9[%c0_14, %c0_15] : memref<64x128xf32, #tpu.memory_space<vmem>>, vector<8x128xf32>
    %14 = arith.negf %13 : vector<8x128xf32>
    %15 = math.exp %14 : vector<8x128xf32>
    %cst_16 = arith.constant 1.000000e+00 : f32
    %16 = vector.broadcast %cst_16 : f32 to vector<8x128xf32>
    %17 = arith.addf %16, %15 : vector<8x128xf32>
    %18 = arith.divf %16, %17 : vector<8x128xf32>
    %19 = math.tanh %13 : vector<8x128xf32>
    %20 = vector.extract_strided_slice %18 {offsets = [0, 0], sizes = [8, 32], strides = [1, 1]} : vector<8x128xf32> to vector<8x32xf32>
    %21 = vector.extract_strided_slice %18 {offsets = [0, 32], sizes = [8, 32], strides = [1, 1]} : vector<8x128xf32> to vector<8x32xf32>
    %22 = vector.extract_strided_slice %19 {offsets = [0, 64], sizes = [8, 32], strides = [1, 1]} : vector<8x128xf32> to vector<8x32xf32>
    %23 = vector.extract_strided_slice %18 {offsets = [0, 96], sizes = [8, 32], strides = [1, 1]} : vector<8x128xf32> to vector<8x32xf32>
    %24 = arith.mulf %21, %12 : vector<8x32xf32>
    %25 = arith.mulf %20, %22 : vector<8x32xf32>
    %26 = arith.addf %24, %25 : vector<8x32xf32>
    %27 = math.tanh %26 : vector<8x32xf32>
    %28 = arith.mulf %23, %27 : vector<8x32xf32>
    %cst_17 = arith.constant dense<0.000000e+00> : vector<8x256xf32>
    %29 = tpu.matmul %28, %7, %cst_17 {dimension_numbers = #tpu.dot_dimension_numbers<[1], [0], [0], [1], [0, 0, 1, 1], [], []>} : vector<8x32xf32>, vector<32x256xf32>, vector<8x256xf32> -> vector<8x256xf32>
    %30 = vector.extract_strided_slice %29 {offsets = [0, 0], sizes = [8, 128], strides = [1, 1]} : vector<8x256xf32> to vector<8x128xf32>
    %31 = arith.addf %30, %11 : vector<8x128xf32>
    %32 = arith.negf %31 : vector<8x128xf32>
    %33 = math.exp %32 : vector<8x128xf32>
    %cst_18 = arith.constant 1.000000e+00 : f32
    %34 = vector.broadcast %cst_18 : f32 to vector<8x128xf32>
    %35 = arith.addf %34, %33 : vector<8x128xf32>
    %36 = arith.divf %34, %35 : vector<8x128xf32>
    %37 = math.tanh %31 : vector<8x128xf32>
    %38 = vector.extract_strided_slice %36 {offsets = [0, 0], sizes = [8, 32], strides = [1, 1]} : vector<8x128xf32> to vector<8x32xf32>
    %39 = vector.extract_strided_slice %36 {offsets = [0, 32], sizes = [8, 32], strides = [1, 1]} : vector<8x128xf32> to vector<8x32xf32>
    %40 = vector.extract_strided_slice %37 {offsets = [0, 64], sizes = [8, 32], strides = [1, 1]} : vector<8x128xf32> to vector<8x32xf32>
    %41 = vector.extract_strided_slice %36 {offsets = [0, 96], sizes = [8, 32], strides = [1, 1]} : vector<8x128xf32> to vector<8x32xf32>
    %42 = arith.mulf %39, %12 : vector<8x32xf32>
    %43 = arith.mulf %38, %40 : vector<8x32xf32>
    %44 = arith.addf %42, %43 : vector<8x32xf32>
    %45 = math.tanh %44 : vector<8x32xf32>
    %46 = arith.mulf %41, %45 : vector<8x32xf32>
    %47 = vector.extract_strided_slice %29 {offsets = [0, 128], sizes = [8, 128], strides = [1, 1]} : vector<8x256xf32> to vector<8x128xf32>
    %cst_19 = arith.constant dense<0.000000e+00> : vector<8x128xf32>
    %48 = tpu.matmul %46, %8, %cst_19 {dimension_numbers = #tpu.dot_dimension_numbers<[1], [0], [0], [1], [0, 0, 1, 1], [], []>} : vector<8x32xf32>, vector<32x128xf32>, vector<8x128xf32> -> vector<8x128xf32>
    %c8 = arith.constant 8 : index
    %c0_20 = arith.constant 0 : index
    %49 = vector.load %arg9[%c8, %c0_20] : memref<64x128xf32, #tpu.memory_space<vmem>>, vector<8x128xf32>
    %50 = arith.addf %47, %49 : vector<8x128xf32>
    %51 = arith.negf %50 : vector<8x128xf32>
    %52 = math.exp %51 : vector<8x128xf32>
    %cst_21 = arith.constant 1.000000e+00 : f32
    %53 = vector.broadcast %cst_21 : f32 to vector<8x128xf32>
    %54 = arith.addf %53, %52 : vector<8x128xf32>
    %55 = arith.divf %53, %54 : vector<8x128xf32>
    %56 = math.tanh %50 : vector<8x128xf32>
    %57 = vector.extract_strided_slice %55 {offsets = [0, 0], sizes = [8, 32], strides = [1, 1]} : vector<8x128xf32> to vector<8x32xf32>
    %58 = vector.extract_strided_slice %55 {offsets = [0, 32], sizes = [8, 32], strides = [1, 1]} : vector<8x128xf32> to vector<8x32xf32>
    %59 = vector.extract_strided_slice %56 {offsets = [0, 64], sizes = [8, 32], strides = [1, 1]} : vector<8x128xf32> to vector<8x32xf32>
    %60 = vector.extract_strided_slice %55 {offsets = [0, 96], sizes = [8, 32], strides = [1, 1]} : vector<8x128xf32> to vector<8x32xf32>
    %61 = arith.mulf %58, %26 : vector<8x32xf32>
    %62 = arith.mulf %57, %59 : vector<8x32xf32>
    %63 = arith.addf %61, %62 : vector<8x32xf32>
    %64 = math.tanh %63 : vector<8x32xf32>
    %65 = arith.mulf %60, %64 : vector<8x32xf32>
    %cst_22 = arith.constant dense<0.000000e+00> : vector<8x256xf32>
    %66 = tpu.matmul %65, %7, %cst_22 {dimension_numbers = #tpu.dot_dimension_numbers<[1], [0], [0], [1], [0, 0, 1, 1], [], []>} : vector<8x32xf32>, vector<32x256xf32>, vector<8x256xf32> -> vector<8x256xf32>
    %67 = vector.extract_strided_slice %66 {offsets = [0, 0], sizes = [8, 128], strides = [1, 1]} : vector<8x256xf32> to vector<8x128xf32>
    %68 = vector.extract_strided_slice %66 {offsets = [0, 128], sizes = [8, 128], strides = [1, 1]} : vector<8x256xf32> to vector<8x128xf32>
    %69 = arith.addf %67, %48 : vector<8x128xf32>
    %70 = arith.addf %69, %11 : vector<8x128xf32>
    %71 = arith.negf %70 : vector<8x128xf32>
    %72 = math.exp %71 : vector<8x128xf32>
    %cst_23 = arith.constant 1.000000e+00 : f32
    %73 = vector.broadcast %cst_23 : f32 to vector<8x128xf32>
    %74 = arith.addf %73, %72 : vector<8x128xf32>
    %75 = arith.divf %73, %74 : vector<8x128xf32>
    %76 = math.tanh %70 : vector<8x128xf32>
    %77 = vector.extract_strided_slice %75 {offsets = [0, 0], sizes = [8, 32], strides = [1, 1]} : vector<8x128xf32> to vector<8x32xf32>
    %78 = vector.extract_strided_slice %75 {offsets = [0, 32], sizes = [8, 32], strides = [1, 1]} : vector<8x128xf32> to vector<8x32xf32>
    %79 = vector.extract_strided_slice %76 {offsets = [0, 64], sizes = [8, 32], strides = [1, 1]} : vector<8x128xf32> to vector<8x32xf32>
    %80 = vector.extract_strided_slice %75 {offsets = [0, 96], sizes = [8, 32], strides = [1, 1]} : vector<8x128xf32> to vector<8x32xf32>
    %81 = arith.mulf %78, %44 : vector<8x32xf32>
    %82 = arith.mulf %77, %79 : vector<8x32xf32>
    %83 = arith.addf %81, %82 : vector<8x32xf32>
    %84 = math.tanh %83 : vector<8x32xf32>
    %85 = arith.mulf %80, %84 : vector<8x32xf32>
    %cst_24 = arith.constant dense<0.000000e+00> : vector<8x128xf32>
    %86 = tpu.matmul %85, %8, %cst_24 {dimension_numbers = #tpu.dot_dimension_numbers<[1], [0], [0], [1], [0, 0, 1, 1], [], []>} : vector<8x32xf32>, vector<32x128xf32>, vector<8x128xf32> -> vector<8x128xf32>
    %c16 = arith.constant 16 : index
    %c0_25 = arith.constant 0 : index
    %87 = vector.load %arg9[%c16, %c0_25] : memref<64x128xf32, #tpu.memory_space<vmem>>, vector<8x128xf32>
    %88 = arith.addf %68, %87 : vector<8x128xf32>
    %89 = arith.negf %88 : vector<8x128xf32>
    %90 = math.exp %89 : vector<8x128xf32>
    %cst_26 = arith.constant 1.000000e+00 : f32
    %91 = vector.broadcast %cst_26 : f32 to vector<8x128xf32>
    %92 = arith.addf %91, %90 : vector<8x128xf32>
    %93 = arith.divf %91, %92 : vector<8x128xf32>
    %94 = math.tanh %88 : vector<8x128xf32>
    %95 = vector.extract_strided_slice %93 {offsets = [0, 0], sizes = [8, 32], strides = [1, 1]} : vector<8x128xf32> to vector<8x32xf32>
    %96 = vector.extract_strided_slice %93 {offsets = [0, 32], sizes = [8, 32], strides = [1, 1]} : vector<8x128xf32> to vector<8x32xf32>
    %97 = vector.extract_strided_slice %94 {offsets = [0, 64], sizes = [8, 32], strides = [1, 1]} : vector<8x128xf32> to vector<8x32xf32>
    %98 = vector.extract_strided_slice %93 {offsets = [0, 96], sizes = [8, 32], strides = [1, 1]} : vector<8x128xf32> to vector<8x32xf32>
    %99 = arith.mulf %96, %63 : vector<8x32xf32>
    %100 = arith.mulf %95, %97 : vector<8x32xf32>
    %101 = arith.addf %99, %100 : vector<8x32xf32>
    %102 = math.tanh %101 : vector<8x32xf32>
    %103 = arith.mulf %98, %102 : vector<8x32xf32>
    %cst_27 = arith.constant dense<0.000000e+00> : vector<8x256xf32>
    %104 = tpu.matmul %103, %7, %cst_27 {dimension_numbers = #tpu.dot_dimension_numbers<[1], [0], [0], [1], [0, 0, 1, 1], [], []>} : vector<8x32xf32>, vector<32x256xf32>, vector<8x256xf32> -> vector<8x256xf32>
    %105 = vector.extract_strided_slice %104 {offsets = [0, 0], sizes = [8, 128], strides = [1, 1]} : vector<8x256xf32> to vector<8x128xf32>
    %106 = vector.extract_strided_slice %104 {offsets = [0, 128], sizes = [8, 128], strides = [1, 1]} : vector<8x256xf32> to vector<8x128xf32>
    %107 = arith.addf %105, %86 : vector<8x128xf32>
    %108 = arith.addf %107, %11 : vector<8x128xf32>
    %109 = arith.negf %108 : vector<8x128xf32>
    %110 = math.exp %109 : vector<8x128xf32>
    %cst_28 = arith.constant 1.000000e+00 : f32
    %111 = vector.broadcast %cst_28 : f32 to vector<8x128xf32>
    %112 = arith.addf %111, %110 : vector<8x128xf32>
    %113 = arith.divf %111, %112 : vector<8x128xf32>
    %114 = math.tanh %108 : vector<8x128xf32>
    %115 = vector.extract_strided_slice %113 {offsets = [0, 0], sizes = [8, 32], strides = [1, 1]} : vector<8x128xf32> to vector<8x32xf32>
    %116 = vector.extract_strided_slice %113 {offsets = [0, 32], sizes = [8, 32], strides = [1, 1]} : vector<8x128xf32> to vector<8x32xf32>
    %117 = vector.extract_strided_slice %114 {offsets = [0, 64], sizes = [8, 32], strides = [1, 1]} : vector<8x128xf32> to vector<8x32xf32>
    %118 = vector.extract_strided_slice %113 {offsets = [0, 96], sizes = [8, 32], strides = [1, 1]} : vector<8x128xf32> to vector<8x32xf32>
    %119 = arith.mulf %116, %83 : vector<8x32xf32>
    %120 = arith.mulf %115, %117 : vector<8x32xf32>
    %121 = arith.addf %119, %120 : vector<8x32xf32>
    %122 = math.tanh %121 : vector<8x32xf32>
    %123 = arith.mulf %118, %122 : vector<8x32xf32>
    %cst_29 = arith.constant dense<0.000000e+00> : vector<8x128xf32>
    %124 = tpu.matmul %123, %8, %cst_29 {dimension_numbers = #tpu.dot_dimension_numbers<[1], [0], [0], [1], [0, 0, 1, 1], [], []>} : vector<8x32xf32>, vector<32x128xf32>, vector<8x128xf32> -> vector<8x128xf32>
    %c24 = arith.constant 24 : index
    %c0_30 = arith.constant 0 : index
    %125 = vector.load %arg9[%c24, %c0_30] : memref<64x128xf32, #tpu.memory_space<vmem>>, vector<8x128xf32>
    %126 = arith.addf %106, %125 : vector<8x128xf32>
    %127 = arith.negf %126 : vector<8x128xf32>
    %128 = math.exp %127 : vector<8x128xf32>
    %cst_31 = arith.constant 1.000000e+00 : f32
    %129 = vector.broadcast %cst_31 : f32 to vector<8x128xf32>
    %130 = arith.addf %129, %128 : vector<8x128xf32>
    %131 = arith.divf %129, %130 : vector<8x128xf32>
    %132 = math.tanh %126 : vector<8x128xf32>
    %133 = vector.extract_strided_slice %131 {offsets = [0, 0], sizes = [8, 32], strides = [1, 1]} : vector<8x128xf32> to vector<8x32xf32>
    %134 = vector.extract_strided_slice %131 {offsets = [0, 32], sizes = [8, 32], strides = [1, 1]} : vector<8x128xf32> to vector<8x32xf32>
    %135 = vector.extract_strided_slice %132 {offsets = [0, 64], sizes = [8, 32], strides = [1, 1]} : vector<8x128xf32> to vector<8x32xf32>
    %136 = vector.extract_strided_slice %131 {offsets = [0, 96], sizes = [8, 32], strides = [1, 1]} : vector<8x128xf32> to vector<8x32xf32>
    %137 = arith.mulf %134, %101 : vector<8x32xf32>
    %138 = arith.mulf %133, %135 : vector<8x32xf32>
    %139 = arith.addf %137, %138 : vector<8x32xf32>
    %140 = math.tanh %139 : vector<8x32xf32>
    %141 = arith.mulf %136, %140 : vector<8x32xf32>
    %cst_32 = arith.constant dense<0.000000e+00> : vector<8x256xf32>
    %142 = tpu.matmul %141, %7, %cst_32 {dimension_numbers = #tpu.dot_dimension_numbers<[1], [0], [0], [1], [0, 0, 1, 1], [], []>} : vector<8x32xf32>, vector<32x256xf32>, vector<8x256xf32> -> vector<8x256xf32>
    %143 = vector.extract_strided_slice %142 {offsets = [0, 0], sizes = [8, 128], strides = [1, 1]} : vector<8x256xf32> to vector<8x128xf32>
    %144 = vector.extract_strided_slice %142 {offsets = [0, 128], sizes = [8, 128], strides = [1, 1]} : vector<8x256xf32> to vector<8x128xf32>
    %145 = arith.addf %143, %124 : vector<8x128xf32>
    %146 = arith.addf %145, %11 : vector<8x128xf32>
    %147 = arith.negf %146 : vector<8x128xf32>
    %148 = math.exp %147 : vector<8x128xf32>
    %cst_33 = arith.constant 1.000000e+00 : f32
    %149 = vector.broadcast %cst_33 : f32 to vector<8x128xf32>
    %150 = arith.addf %149, %148 : vector<8x128xf32>
    %151 = arith.divf %149, %150 : vector<8x128xf32>
    %152 = math.tanh %146 : vector<8x128xf32>
    %153 = vector.extract_strided_slice %151 {offsets = [0, 0], sizes = [8, 32], strides = [1, 1]} : vector<8x128xf32> to vector<8x32xf32>
    %154 = vector.extract_strided_slice %151 {offsets = [0, 32], sizes = [8, 32], strides = [1, 1]} : vector<8x128xf32> to vector<8x32xf32>
    %155 = vector.extract_strided_slice %152 {offsets = [0, 64], sizes = [8, 32], strides = [1, 1]} : vector<8x128xf32> to vector<8x32xf32>
    %156 = vector.extract_strided_slice %151 {offsets = [0, 96], sizes = [8, 32], strides = [1, 1]} : vector<8x128xf32> to vector<8x32xf32>
    %157 = arith.mulf %154, %121 : vector<8x32xf32>
    %158 = arith.mulf %153, %155 : vector<8x32xf32>
    %159 = arith.addf %157, %158 : vector<8x32xf32>
    %160 = math.tanh %159 : vector<8x32xf32>
    %161 = arith.mulf %156, %160 : vector<8x32xf32>
    %cst_34 = arith.constant dense<0.000000e+00> : vector<8x128xf32>
    %162 = tpu.matmul %161, %8, %cst_34 {dimension_numbers = #tpu.dot_dimension_numbers<[1], [0], [0], [1], [0, 0, 1, 1], [], []>} : vector<8x32xf32>, vector<32x128xf32>, vector<8x128xf32> -> vector<8x128xf32>
    %c32 = arith.constant 32 : index
    %c0_35 = arith.constant 0 : index
    %163 = vector.load %arg9[%c32, %c0_35] : memref<64x128xf32, #tpu.memory_space<vmem>>, vector<8x128xf32>
    %164 = arith.addf %144, %163 : vector<8x128xf32>
    %165 = arith.negf %164 : vector<8x128xf32>
    %166 = math.exp %165 : vector<8x128xf32>
    %cst_36 = arith.constant 1.000000e+00 : f32
    %167 = vector.broadcast %cst_36 : f32 to vector<8x128xf32>
    %168 = arith.addf %167, %166 : vector<8x128xf32>
    %169 = arith.divf %167, %168 : vector<8x128xf32>
    %170 = math.tanh %164 : vector<8x128xf32>
    %171 = vector.extract_strided_slice %169 {offsets = [0, 0], sizes = [8, 32], strides = [1, 1]} : vector<8x128xf32> to vector<8x32xf32>
    %172 = vector.extract_strided_slice %169 {offsets = [0, 32], sizes = [8, 32], strides = [1, 1]} : vector<8x128xf32> to vector<8x32xf32>
    %173 = vector.extract_strided_slice %170 {offsets = [0, 64], sizes = [8, 32], strides = [1, 1]} : vector<8x128xf32> to vector<8x32xf32>
    %174 = vector.extract_strided_slice %169 {offsets = [0, 96], sizes = [8, 32], strides = [1, 1]} : vector<8x128xf32> to vector<8x32xf32>
    %175 = arith.mulf %172, %139 : vector<8x32xf32>
    %176 = arith.mulf %171, %173 : vector<8x32xf32>
    %177 = arith.addf %175, %176 : vector<8x32xf32>
    %178 = math.tanh %177 : vector<8x32xf32>
    %179 = arith.mulf %174, %178 : vector<8x32xf32>
    %cst_37 = arith.constant dense<0.000000e+00> : vector<8x256xf32>
    %180 = tpu.matmul %179, %7, %cst_37 {dimension_numbers = #tpu.dot_dimension_numbers<[1], [0], [0], [1], [0, 0, 1, 1], [], []>} : vector<8x32xf32>, vector<32x256xf32>, vector<8x256xf32> -> vector<8x256xf32>
    %181 = vector.extract_strided_slice %180 {offsets = [0, 0], sizes = [8, 128], strides = [1, 1]} : vector<8x256xf32> to vector<8x128xf32>
    %182 = vector.extract_strided_slice %180 {offsets = [0, 128], sizes = [8, 128], strides = [1, 1]} : vector<8x256xf32> to vector<8x128xf32>
    %183 = arith.addf %181, %162 : vector<8x128xf32>
    %184 = arith.addf %183, %11 : vector<8x128xf32>
    %185 = arith.negf %184 : vector<8x128xf32>
    %186 = math.exp %185 : vector<8x128xf32>
    %cst_38 = arith.constant 1.000000e+00 : f32
    %187 = vector.broadcast %cst_38 : f32 to vector<8x128xf32>
    %188 = arith.addf %187, %186 : vector<8x128xf32>
    %189 = arith.divf %187, %188 : vector<8x128xf32>
    %190 = math.tanh %184 : vector<8x128xf32>
    %191 = vector.extract_strided_slice %189 {offsets = [0, 0], sizes = [8, 32], strides = [1, 1]} : vector<8x128xf32> to vector<8x32xf32>
    %192 = vector.extract_strided_slice %189 {offsets = [0, 32], sizes = [8, 32], strides = [1, 1]} : vector<8x128xf32> to vector<8x32xf32>
    %193 = vector.extract_strided_slice %190 {offsets = [0, 64], sizes = [8, 32], strides = [1, 1]} : vector<8x128xf32> to vector<8x32xf32>
    %194 = vector.extract_strided_slice %189 {offsets = [0, 96], sizes = [8, 32], strides = [1, 1]} : vector<8x128xf32> to vector<8x32xf32>
    %195 = arith.mulf %192, %159 : vector<8x32xf32>
    %196 = arith.mulf %191, %193 : vector<8x32xf32>
    %197 = arith.addf %195, %196 : vector<8x32xf32>
    %198 = math.tanh %197 : vector<8x32xf32>
    %199 = arith.mulf %194, %198 : vector<8x32xf32>
    %cst_39 = arith.constant dense<0.000000e+00> : vector<8x128xf32>
    %200 = tpu.matmul %199, %8, %cst_39 {dimension_numbers = #tpu.dot_dimension_numbers<[1], [0], [0], [1], [0, 0, 1, 1], [], []>} : vector<8x32xf32>, vector<32x128xf32>, vector<8x128xf32> -> vector<8x128xf32>
    %c40 = arith.constant 40 : index
    %c0_40 = arith.constant 0 : index
    %201 = vector.load %arg9[%c40, %c0_40] : memref<64x128xf32, #tpu.memory_space<vmem>>, vector<8x128xf32>
    %202 = arith.addf %182, %201 : vector<8x128xf32>
    %203 = arith.negf %202 : vector<8x128xf32>
    %204 = math.exp %203 : vector<8x128xf32>
    %cst_41 = arith.constant 1.000000e+00 : f32
    %205 = vector.broadcast %cst_41 : f32 to vector<8x128xf32>
    %206 = arith.addf %205, %204 : vector<8x128xf32>
    %207 = arith.divf %205, %206 : vector<8x128xf32>
    %208 = math.tanh %202 : vector<8x128xf32>
    %209 = vector.extract_strided_slice %207 {offsets = [0, 0], sizes = [8, 32], strides = [1, 1]} : vector<8x128xf32> to vector<8x32xf32>
    %210 = vector.extract_strided_slice %207 {offsets = [0, 32], sizes = [8, 32], strides = [1, 1]} : vector<8x128xf32> to vector<8x32xf32>
    %211 = vector.extract_strided_slice %208 {offsets = [0, 64], sizes = [8, 32], strides = [1, 1]} : vector<8x128xf32> to vector<8x32xf32>
    %212 = vector.extract_strided_slice %207 {offsets = [0, 96], sizes = [8, 32], strides = [1, 1]} : vector<8x128xf32> to vector<8x32xf32>
    %213 = arith.mulf %210, %177 : vector<8x32xf32>
    %214 = arith.mulf %209, %211 : vector<8x32xf32>
    %215 = arith.addf %213, %214 : vector<8x32xf32>
    %216 = math.tanh %215 : vector<8x32xf32>
    %217 = arith.mulf %212, %216 : vector<8x32xf32>
    %cst_42 = arith.constant dense<0.000000e+00> : vector<8x256xf32>
    %218 = tpu.matmul %217, %7, %cst_42 {dimension_numbers = #tpu.dot_dimension_numbers<[1], [0], [0], [1], [0, 0, 1, 1], [], []>} : vector<8x32xf32>, vector<32x256xf32>, vector<8x256xf32> -> vector<8x256xf32>
    %219 = vector.extract_strided_slice %218 {offsets = [0, 0], sizes = [8, 128], strides = [1, 1]} : vector<8x256xf32> to vector<8x128xf32>
    %220 = vector.extract_strided_slice %218 {offsets = [0, 128], sizes = [8, 128], strides = [1, 1]} : vector<8x256xf32> to vector<8x128xf32>
    %221 = arith.addf %219, %200 : vector<8x128xf32>
    %222 = arith.addf %221, %11 : vector<8x128xf32>
    %223 = arith.negf %222 : vector<8x128xf32>
    %224 = math.exp %223 : vector<8x128xf32>
    %cst_43 = arith.constant 1.000000e+00 : f32
    %225 = vector.broadcast %cst_43 : f32 to vector<8x128xf32>
    %226 = arith.addf %225, %224 : vector<8x128xf32>
    %227 = arith.divf %225, %226 : vector<8x128xf32>
    %228 = math.tanh %222 : vector<8x128xf32>
    %229 = vector.extract_strided_slice %227 {offsets = [0, 0], sizes = [8, 32], strides = [1, 1]} : vector<8x128xf32> to vector<8x32xf32>
    %230 = vector.extract_strided_slice %227 {offsets = [0, 32], sizes = [8, 32], strides = [1, 1]} : vector<8x128xf32> to vector<8x32xf32>
    %231 = vector.extract_strided_slice %228 {offsets = [0, 64], sizes = [8, 32], strides = [1, 1]} : vector<8x128xf32> to vector<8x32xf32>
    %232 = vector.extract_strided_slice %227 {offsets = [0, 96], sizes = [8, 32], strides = [1, 1]} : vector<8x128xf32> to vector<8x32xf32>
    %233 = arith.mulf %230, %197 : vector<8x32xf32>
    %234 = arith.mulf %229, %231 : vector<8x32xf32>
    %235 = arith.addf %233, %234 : vector<8x32xf32>
    %236 = math.tanh %235 : vector<8x32xf32>
    %237 = arith.mulf %232, %236 : vector<8x32xf32>
    %cst_44 = arith.constant dense<0.000000e+00> : vector<8x128xf32>
    %238 = tpu.matmul %237, %8, %cst_44 {dimension_numbers = #tpu.dot_dimension_numbers<[1], [0], [0], [1], [0, 0, 1, 1], [], []>} : vector<8x32xf32>, vector<32x128xf32>, vector<8x128xf32> -> vector<8x128xf32>
    %c48 = arith.constant 48 : index
    %c0_45 = arith.constant 0 : index
    %239 = vector.load %arg9[%c48, %c0_45] : memref<64x128xf32, #tpu.memory_space<vmem>>, vector<8x128xf32>
    %240 = arith.addf %220, %239 : vector<8x128xf32>
    %241 = arith.negf %240 : vector<8x128xf32>
    %242 = math.exp %241 : vector<8x128xf32>
    %cst_46 = arith.constant 1.000000e+00 : f32
    %243 = vector.broadcast %cst_46 : f32 to vector<8x128xf32>
    %244 = arith.addf %243, %242 : vector<8x128xf32>
    %245 = arith.divf %243, %244 : vector<8x128xf32>
    %246 = math.tanh %240 : vector<8x128xf32>
    %247 = vector.extract_strided_slice %245 {offsets = [0, 0], sizes = [8, 32], strides = [1, 1]} : vector<8x128xf32> to vector<8x32xf32>
    %248 = vector.extract_strided_slice %245 {offsets = [0, 32], sizes = [8, 32], strides = [1, 1]} : vector<8x128xf32> to vector<8x32xf32>
    %249 = vector.extract_strided_slice %246 {offsets = [0, 64], sizes = [8, 32], strides = [1, 1]} : vector<8x128xf32> to vector<8x32xf32>
    %250 = vector.extract_strided_slice %245 {offsets = [0, 96], sizes = [8, 32], strides = [1, 1]} : vector<8x128xf32> to vector<8x32xf32>
    %251 = arith.mulf %248, %215 : vector<8x32xf32>
    %252 = arith.mulf %247, %249 : vector<8x32xf32>
    %253 = arith.addf %251, %252 : vector<8x32xf32>
    %254 = math.tanh %253 : vector<8x32xf32>
    %255 = arith.mulf %250, %254 : vector<8x32xf32>
    %cst_47 = arith.constant dense<0.000000e+00> : vector<8x256xf32>
    %256 = tpu.matmul %255, %7, %cst_47 {dimension_numbers = #tpu.dot_dimension_numbers<[1], [0], [0], [1], [0, 0, 1, 1], [], []>} : vector<8x32xf32>, vector<32x256xf32>, vector<8x256xf32> -> vector<8x256xf32>
    %257 = vector.extract_strided_slice %256 {offsets = [0, 0], sizes = [8, 128], strides = [1, 1]} : vector<8x256xf32> to vector<8x128xf32>
    %258 = vector.extract_strided_slice %256 {offsets = [0, 128], sizes = [8, 128], strides = [1, 1]} : vector<8x256xf32> to vector<8x128xf32>
    %259 = arith.addf %257, %238 : vector<8x128xf32>
    %260 = arith.addf %259, %11 : vector<8x128xf32>
    %261 = arith.negf %260 : vector<8x128xf32>
    %262 = math.exp %261 : vector<8x128xf32>
    %cst_48 = arith.constant 1.000000e+00 : f32
    %263 = vector.broadcast %cst_48 : f32 to vector<8x128xf32>
    %264 = arith.addf %263, %262 : vector<8x128xf32>
    %265 = arith.divf %263, %264 : vector<8x128xf32>
    %266 = math.tanh %260 : vector<8x128xf32>
    %267 = vector.extract_strided_slice %265 {offsets = [0, 0], sizes = [8, 32], strides = [1, 1]} : vector<8x128xf32> to vector<8x32xf32>
    %268 = vector.extract_strided_slice %265 {offsets = [0, 32], sizes = [8, 32], strides = [1, 1]} : vector<8x128xf32> to vector<8x32xf32>
    %269 = vector.extract_strided_slice %266 {offsets = [0, 64], sizes = [8, 32], strides = [1, 1]} : vector<8x128xf32> to vector<8x32xf32>
    %270 = vector.extract_strided_slice %265 {offsets = [0, 96], sizes = [8, 32], strides = [1, 1]} : vector<8x128xf32> to vector<8x32xf32>
    %271 = arith.mulf %268, %235 : vector<8x32xf32>
    %272 = arith.mulf %267, %269 : vector<8x32xf32>
    %273 = arith.addf %271, %272 : vector<8x32xf32>
    %274 = math.tanh %273 : vector<8x32xf32>
    %275 = arith.mulf %270, %274 : vector<8x32xf32>
    %cst_49 = arith.constant dense<0.000000e+00> : vector<8x128xf32>
    %276 = tpu.matmul %275, %8, %cst_49 {dimension_numbers = #tpu.dot_dimension_numbers<[1], [0], [0], [1], [0, 0, 1, 1], [], []>} : vector<8x32xf32>, vector<32x128xf32>, vector<8x128xf32> -> vector<8x128xf32>
    %c56 = arith.constant 56 : index
    %c0_50 = arith.constant 0 : index
    %277 = vector.load %arg9[%c56, %c0_50] : memref<64x128xf32, #tpu.memory_space<vmem>>, vector<8x128xf32>
    %278 = arith.addf %258, %277 : vector<8x128xf32>
    %279 = arith.negf %278 : vector<8x128xf32>
    %280 = math.exp %279 : vector<8x128xf32>
    %cst_51 = arith.constant 1.000000e+00 : f32
    %281 = vector.broadcast %cst_51 : f32 to vector<8x128xf32>
    %282 = arith.addf %281, %280 : vector<8x128xf32>
    %283 = arith.divf %281, %282 : vector<8x128xf32>
    %284 = math.tanh %278 : vector<8x128xf32>
    %285 = vector.extract_strided_slice %283 {offsets = [0, 0], sizes = [8, 32], strides = [1, 1]} : vector<8x128xf32> to vector<8x32xf32>
    %286 = vector.extract_strided_slice %283 {offsets = [0, 32], sizes = [8, 32], strides = [1, 1]} : vector<8x128xf32> to vector<8x32xf32>
    %287 = vector.extract_strided_slice %284 {offsets = [0, 64], sizes = [8, 32], strides = [1, 1]} : vector<8x128xf32> to vector<8x32xf32>
    %288 = vector.extract_strided_slice %283 {offsets = [0, 96], sizes = [8, 32], strides = [1, 1]} : vector<8x128xf32> to vector<8x32xf32>
    %289 = arith.mulf %286, %253 : vector<8x32xf32>
    %290 = arith.mulf %285, %287 : vector<8x32xf32>
    %291 = arith.addf %289, %290 : vector<8x32xf32>
    %292 = math.tanh %291 : vector<8x32xf32>
    %293 = arith.mulf %288, %292 : vector<8x32xf32>
    %294 = vector.extract_strided_slice %7 {offsets = [0, 0], sizes = [32, 128], strides = [1, 1]} : vector<32x256xf32> to vector<32x128xf32>
    %cst_52 = arith.constant dense<0.000000e+00> : vector<8x128xf32>
    %295 = tpu.matmul %293, %294, %cst_52 {dimension_numbers = #tpu.dot_dimension_numbers<[1], [0], [0], [1], [0, 0, 1, 1], [], []>} : vector<8x32xf32>, vector<32x128xf32>, vector<8x128xf32> -> vector<8x128xf32>
    %296 = arith.addf %295, %276 : vector<8x128xf32>
    %297 = arith.addf %296, %11 : vector<8x128xf32>
    %298 = arith.negf %297 : vector<8x128xf32>
    %299 = math.exp %298 : vector<8x128xf32>
    %cst_53 = arith.constant 1.000000e+00 : f32
    %300 = vector.broadcast %cst_53 : f32 to vector<8x128xf32>
    %301 = arith.addf %300, %299 : vector<8x128xf32>
    %302 = arith.divf %300, %301 : vector<8x128xf32>
    %303 = math.tanh %297 : vector<8x128xf32>
    %304 = vector.extract_strided_slice %302 {offsets = [0, 0], sizes = [8, 32], strides = [1, 1]} : vector<8x128xf32> to vector<8x32xf32>
    %305 = vector.extract_strided_slice %302 {offsets = [0, 32], sizes = [8, 32], strides = [1, 1]} : vector<8x128xf32> to vector<8x32xf32>
    %306 = vector.extract_strided_slice %303 {offsets = [0, 64], sizes = [8, 32], strides = [1, 1]} : vector<8x128xf32> to vector<8x32xf32>
    %307 = vector.extract_strided_slice %302 {offsets = [0, 96], sizes = [8, 32], strides = [1, 1]} : vector<8x128xf32> to vector<8x32xf32>
    %308 = arith.mulf %305, %273 : vector<8x32xf32>
    %309 = arith.mulf %304, %306 : vector<8x32xf32>
    %310 = arith.addf %308, %309 : vector<8x32xf32>
    %311 = math.tanh %310 : vector<8x32xf32>
    %312 = arith.mulf %307, %311 : vector<8x32xf32>
    %c0_54 = arith.constant 0 : index
    %c0_55 = arith.constant 0 : index
    %313 = vector.load %arg6[%c0_54, %c0_55] : memref<32x7xf32, #tpu.memory_space<vmem>>, vector<32x7xf32>
    %cst_56 = arith.constant dense<0.000000e+00> : vector<8x7xf32>
    %314 = tpu.matmul %312, %313, %cst_56 {dimension_numbers = #tpu.dot_dimension_numbers<[1], [0], [0], [1], [0, 0, 1, 1], [], []>} : vector<8x32xf32>, vector<32x7xf32>, vector<8x7xf32> -> vector<8x7xf32>
    %c0_57 = arith.constant 0 : index
    %c0_58 = arith.constant 0 : index
    %315 = vector.load %arg7[%c0_57, %c0_58] : memref<1x7xf32, #tpu.memory_space<vmem>>, vector<1x7xf32>
    %316 = vector.broadcast %315 : vector<1x7xf32> to vector<8x7xf32>
    %317 = arith.addf %314, %316 : vector<8x7xf32>
    %c0_59 = arith.constant 0 : index
    %c0_60 = arith.constant 0 : index
    %318 = vector.load %arg8[%c0_59, %c0_60] : memref<8x7xf32, #tpu.memory_space<vmem>>, vector<8x7xf32>
    tpu.vector_store %arg8[%c0_59, %c0_60], %317 {strides = array<i32>} : memref<8x7xf32, #tpu.memory_space<vmem>>, vector<8x7xf32>,
    return
  }
}

</mosaic_0001>

<bundles_post_ra>
// kernel: tpu_custom_call.1
= control target key start
LH: loop header
LB: loop body
LE: loop exit
PB: predicated region body
PF: predicated region fallthrough
CT: control target
= control target key end

     0   :  { %13 = vsyncpa [#allocation4], 0  ;;  %s2800_s0 = inlined_call_operand.hbm [shape: f32[64,130], index: 0, kind: input, shape index: {}]   ;;  %s2801_s1 = inlined_call_operand.hbm [shape: f32[130,128], index: 1, kind: input, shape index: {}]   ;;  %s2802_s2 = inlined_call_operand.vmem [shape: f32[1,128], index: 2, kind: input, shape index: {}]   ;;  %s2803_s3 = inlined_call_operand.hbm [shape: f32[32,256], index: 3, kind: input, shape index: {}]   ;;  %s2804_s4 = inlined_call_operand.vmem [shape: f32[32,128], index: 4, kind: input, shape index: {}]   ;;  %s2805_s5 = inlined_call_operand.vmem [shape: f32[1,128], index: 5, kind: input, shape index: {}]   ;;  %s2806_s6 = inlined_call_operand.vmem [shape: f32[32,7], index: 6, kind: input, shape index: {}]   ;;  %s2807_s7 = inlined_call_operand.vmem [shape: f32[1,7], index: 7, kind: input, shape index: {}]   ;;  %s2808_s8 = inlined_call_operand.hbm [shape: f32[8,7], index: 8, kind: output, shape index: {}]  }
   0x1   :  { %14 = vsyncpa [#allocation7], 0 }
   0x2   :  { %15 = vsyncpa [#allocation5], 0  ;;  %s2338_s27 = smov [#allocation6]  }
   0x3   :  { %s33_s28 = sshll.u32 %s2338_s27, 4  ;;  %s34_s28 = int_to_ptr.vmem [resolvable:$true] %s33_s28 }
   0x4   :  { %s2260_s29 = scalar_lea.vmem %s34_s28, 2176  ;;  %p2265_p1 = scmp.lt.s32.totalorder %s34_s28, %s34_s28 }
   0x5   :  { %p2261_p0 = scmp.ne.s32.totalorder %s34_s28, %s2260_s29  ;;  %p2266_p2 = scmp.lt.s32.totalorder %s2260_s29, %s2260_s29 }
   0x7   :  { %p2267_p3 = por %p2266_p2, %p2265_p1 }
   0x9   :  { %p2268_p4 = pnand %p2267_p3, %p2261_p0 }
   0xb   :  { %2271 = shalt.err (!%p2268_p4)
}
   0xc   :  { %s2339_s30 = smov 128   ;;  %s2340_s9 = smov 8  }
   0xd   :  { %39 = dma.hbm_to_vmem [thread:$0]  %s2801_s1, 2176, %s34_s28, [#allocation7], %s2339_s30, %s2339_s30, %s2340_s9  }
   0xe   :  { %s2341_s12 = smov [#allocation3]  }
   0xf   :  { %s21_s13 = sshll.u32 %s2341_s12, 4  ;;  %s22_s13 = int_to_ptr.vmem [resolvable:$true] %s21_s13 }
  0x10   :  { %s2280_s14 = scalar_lea.vmem %s22_s13, 2048  ;;  %p2285_p6 = scmp.lt.s32.totalorder %s22_s13, %s22_s13 }
  0x11   :  { %p2281_p5 = scmp.ne.s32.totalorder %s22_s13, %s2280_s14  ;;  %p2286_p7 = scmp.lt.s32.totalorder %s2280_s14, %s2280_s14 }
  0x13   :  { %p2287_p8 = por %p2286_p7, %p2285_p6 }
  0x15   :  { %p2288_p9 = pnand %p2287_p8, %p2281_p5 }
  0x17   :  { %2291 = shalt.err (!%p2288_p9)
}
  0x18   :  { %s2342_s15 = smov 256   ;;  %s2343_s16 = smov 16  }
  0x19   :  { %27 = dma.hbm_to_vmem [thread:$0]  %s2800_s0, 2048, %s22_s13, [#allocation4], %s2342_s15, %s2342_s15, %s2343_s16  }
  0x1a   :  { %s2344_s19 = smov [#allocation8]  }
  0x1b   :  { %s47_s20 = sshll.u32 %s2344_s19, 4  ;;  %s48_s20 = int_to_ptr.vmem [resolvable:$true] %s47_s20 }
  0x1c   :  { %s2300_s1 = scalar_lea.vmem %s48_s20, 1024  ;;  %p2305_p11 = scmp.lt.s32.totalorder %s48_s20, %s48_s20 }
  0x1d   :  { %p2301_p10 = scmp.ne.s32.totalorder %s48_s20, %s2300_s1  ;;  %p2306_p12 = scmp.lt.s32.totalorder %s2300_s1, %s2300_s1 }
  0x1f   :  { %p2307_p13 = por %p2306_p12, %p2305_p11 }
  0x21   :  { %p2308_p0 = pnand %p2307_p13, %p2301_p10 }
  0x23   :  { %2311 = shalt.err (!%p2308_p0)
}
  0x24   :  { %53 = dma.hbm_to_vmem [thread:$0]  %s2803_s3, 1024, %s48_s20, [#allocation7], %s2342_s15, %s2342_s15, %s2343_s16  }
  0x25   :  { %2332 = dma.done.wait [#allocation4], 2048  }
  0x26   :  { %2333 = vsyncadd [#allocation4], 4294965248 }
  0x27   :  { %2334 = dma.done.wait [#allocation7], 3200  }
  0x28   :  { %2335 = vsyncadd [#allocation7], 4294964096  ;;  %v2345_v0 = vmov 0.0   ;;  %v102_v1 = vld [vmem:[#allocation6 + $0x78] sm:$0xff]  ;;  %v101_v2 = vld [vmem:[#allocation6 + $0x70] sm:$0xff]  ;;  %vm111_vm0 = vcmask 15360  }
  0x29   :  { %140 = vmatprep.subr.mxu0 %v2345_v0  ;;  %367 = vmatprep.mubr.f32.mxu1 %v2345_v0  ;;  %v100_v3 = vld [vmem:[#allocation6 + $0x68] sm:$0xff]  ;;  %v99_v4 = vld [vmem:[#allocation6 + $0x60] sm:$0xff]  ;;  %v98_v6 = vld [vmem:[#allocation6 + $0x58] sm:$0xff]  ;;  %vm136_vm1 = vcmask 1041408   ;;  %s2346_s23 = smov 64   ;;  %s2347_s24 = smov 32  }
  0x2a   :  { %141 = vmatpush1.msra.mxu0 %v102_v1  ;;  %v72_v5 = vld [vmem:[#allocation3 + $0x8] sm:$0xff]  ;;  %v97_v7 = vld [vmem:[#allocation6 + $0x50] sm:$0xff]  ;;  %v95_v9 = vld [vmem:[#allocation6 + $0x40] sm:$0xff]  ;;  %vm300_vm2 = vcmask 261120   ;;  %vm2348_vm3 = vmmov 0   ;;  %s2349_s0 = smov [#allocation9]  }
  0x2b   :  { %142 = vmatprep.subr.mxu0 %v2345_v0  ;;  %1924 = vmatprep.mubr.msk.f32.mxu0 %vm111_vm0, %v72_v5  ;;  %v96_v8 = vld [vmem:[#allocation6 + $0x48] sm:$0xff]  ;;  %v94_v10 = vld [vmem:[#allocation6 + $0x38] sm:$0xff]  ;;  %v93_v11 = vld [vmem:[#allocation6 + $0x30] sm:$0xff]  ;;  %vm1904_vm4 = vcmask 56320  }
  0x2c   :  { %143 = vmatpush1.msra.mxu0 %v101_v2  ;;  %v92_v12 = vld [vmem:[#allocation6 + $0x28] sm:$0xff]  ;;  %v91_v13 = vld [vmem:[#allocation6 + $0x20] sm:$0xff]  ;;  %v90_v14 = vld [vmem:[#allocation6 + $0x18] sm:$0xff] }
  0x2d   :  { %144 = vmatprep.subr.mxu0 %v2345_v0  ;;  %v89_v15 = vld [vmem:[#allocation6 + $0x10] sm:$0xff]  ;;  %v88_v16 = vld [vmem:[#allocation6 + $0x8] sm:$0xff]  ;;  %v87_v17 = vld [vmem:[#allocation6] sm:$0xff] }
  0x2e   :  { %145 = vmatpush1.msra.mxu0 %v100_v3  ;;  %v103_v18 = vld [vmem:[#allocation6 + $0x80] sm:$0x3]  ;;  %v2436_v35 = vld [vmem:[#allocation8 + $0x30] sm:$0xff]  ;;  %v2438_v36 = vld [vmem:[#allocation8 + $0x28] sm:$0xff] }
  0x2f   :  { %146 = vmatprep.subr.mxu0 %v2345_v0  ;;  %v71_v19 = vld [vmem:[#allocation3] sm:$0xff]  ;;  %v2441_v37 = vld [vmem:[#allocation8 + $0x20] sm:$0xff]  ;;  %v74_v39 = vld [vmem:[#allocation3 + $0x18] sm:$0xff] }
  0x30   :  { %147 = vmatpush1.msra.mxu0 %v99_v4  ;;  %v2426_v20 = vld [vmem:[%s2802_s2] ss:$0 sm:$0xff]  ;;  %v2449_v40 = vld [vmem:[#allocation8 + $0x10] sm:$0xff]  ;;  %v2453_v41 = vld [vmem:[#allocation8 + $0x8] sm:$0xff] }
  0x31   :  { %148 = vmatprep.subr.mxu0 %v2345_v0  ;;  %v2434_v34 = vld [vmem:[#allocation8 + $0x38] sm:$0xff]  ;;  %v2457_v42 = vld [vmem:[#allocation8] sm:$0xff]  ;;  %v73_v44 = vld [vmem:[#allocation3 + $0x10] sm:$0xff] }
  0x32   :  { %149 = vmatpush1.msra.mxu0 %v98_v6  ;;  %327 = vmatprep.subr.mxu1 %v2434_v34  ;;  %v2445_v38 = vld [vmem:[#allocation8 + $0x18] sm:$0xff] }
  0x33   :  { %150 = vmatprep.subr.mxu0 %v2345_v0  ;;  %328 = vmatpush1.msra.mxu1 %v2436_v35  ;;  %v2475_v50 = vld [vmem:[%s2805_s5] ss:$0 sm:$0xff] }
  0x34   :  { %151 = vmatpush1.msra.mxu0 %v97_v7  ;;  %329 = vmatprep.subr.mxu1 %v2438_v36 }
  0x35   :  { %152 = vmatprep.subr.mxu0 %v2345_v0  ;;  %330 = vmatpush1.msra.mxu1 %v2441_v37 }
  0x36   :  { %153 = vmatpush1.msra.mxu0 %v96_v8  ;;  %331 = vmatprep.subr.mxu1 %v2445_v38 }
  0x37   :  { %154 = vmatprep.subr.mxu0 %v2345_v0  ;;  %332 = vmatpush1.msra.mxu1 %v2449_v40 }
  0x38   :  { %155 = vmatpush1.msra.mxu0 %v95_v9  ;;  %333 = vmatprep.subr.mxu1 %v2453_v41 }
  0x39   :  { %156 = vmatprep.subr.mxu0 %v2345_v0  ;;  %334 = vmatpush1.msra.mxu1 %v2457_v42 }
  0x3a   :  { %157 = vmatpush1.msra.mxu0 %v94_v10  ;;  %2011 = vmatprep.subr.mxu1 %v2345_v0 }
  0x3b   :  { %158 = vmatprep.subr.mxu0 %v2345_v0 }
  0x3c   :  { %159 = vmatpush1.msra.mxu0 %v93_v11 }
  0x3d   :  { %160 = vmatprep.subr.mxu0 %v2345_v0 }
  0x3e   :  { %161 = vmatpush1.msra.mxu0 %v92_v12 }
  0x3f   :  { %162 = vmatprep.subr.mxu0 %v2345_v0 }
  0x40   :  { %163 = vmatpush1.msra.mxu0 %v91_v13  ;;  %v2493_v13 = vld [vmem:[%s2804_s4 + $0x18] sm:$0xff] }
  0x41   :  { %164 = vmatprep.subr.mxu0 %v2345_v0 }
  0x42   :  { %165 = vmatpush1.msra.mxu0 %v90_v14  ;;  %v2498_v14 = vld [vmem:[%s2804_s4 + $0x10] sm:$0xff] }
  0x43   :  { %166 = vmatprep.subr.mxu0 %v2345_v0 }
  0x44   :  { %167 = vmatpush1.msra.mxu0 %v89_v15  ;;  %v2507_v15 = vld [vmem:[%s2804_s4 + $0x8] sm:$0xff] }
  0x45   :  { %168 = vmatprep.subr.mxu0 %v2345_v0 }
  0x46   :  { %169 = vmatpush1.msra.mxu0 %v88_v16  ;;  %v2514_v16 = vld [vmem:[%s2804_s4] sm:$0xff] }
  0x47   :  { %170 = vmatprep.subr.mxu0 %v2345_v0 }
  0x48   :  { %171 = vmatpush1.msra.mxu0 %v87_v17 }
  0x49   :  { %202 = vmatprep.subr.mxu0 %v2345_v0 }
  0x4a   :  { %1923 = vmatpush2.msk.msra.mxu0 %vm136_vm1, %v103_v18 }
  0x4b   :  { %205 = vmatmul.mubr.f32.vlgmr.msra.gmra.mxu0 %v71_v19  ;;  %1138 = vmatprep.subr.mxu0 %v2434_v34  ;;  %v76_v19 = vld [vmem:[#allocation3 + $0x28] sm:$0xff] }
  0x4c   :  { %1139 = vmatpush1.msra.mxu0 %v2436_v35  ;;  %1925 = vmatprep.mubr.msk.f32.mxu0 %vm111_vm0, %v74_v39 }
  0x4d   :  { %1140 = vmatprep.subr.mxu0 %v2438_v36 }
  0x4e   :  { %1141 = vmatpush1.msra.mxu0 %v2441_v37 }
  0x4f   :  { %1142 = vmatprep.subr.mxu0 %v2445_v38  ;;  %210 = vmatmul.mubr.f32.gmra.mxu0 %v73_v44 }
  0x50   :  { %1143 = vmatpush1.msra.mxu0 %v2449_v40  ;;  %1926 = vmatprep.mubr.msk.f32.mxu0 %vm111_vm0, %v76_v19 }
  0x51   :  { %1144 = vmatprep.subr.mxu0 %v2453_v41 }
  0x52   :  { %1145 = vmatpush1.msra.mxu0 %v2457_v42 }
  0x53   :  { %1341 = vmatprep.subr.mxu0 %v2434_v34 }
 0x10b   :  { %v206_v21 = vpop.f32.mrf.mxu0 }
 0x10c   :  { %v207_v22 = vadd.f32 %v2426_v20, %v206_v21  ;;  %v75_v21 = vld [vmem:[#allocation3 + $0x20] sm:$0xff] }
 0x10d   :  { %v208_v23 = vpop.f32.mrf.mxu0  ;;  %215 = vmatmul.mubr.f32.gmra.mxu0 %v75_v21 }
 0x10e   :  { %2122 = vtanh.f32 %v207_v22  ;;  %v1933_v25 = vmul.f32 -1.442695, %v207_v22 }
 0x10f   :  { %v211_v48 = vpop.f32.mrf.mxu0 }
 0x110   :  { %2124 = vpow2.f32 %v1933_v25  ;;  %v212_v51 = vadd.f32 %v2426_v20, %v211_v48 }
 0x111   :  { %v213_v49 = vpop.f32.mrf.mxu0 }
 0x11b   :  { %v2123_v24 = vpop.eup %2122 }
 0x11c   :  { %282 = vrot.lane.b32.xlu0 %v2123_v24, %s2346_s23 }
 0x11d   :  { %v2125_v26 = vpop.eup %2124 }
 0x11e   :  { %v276_v27 = vadd.f32 1.0, %v2125_v26 }
 0x120   :  { %2126 = vrcp.f32 %v276_v27 }
 0x12d   :  { %v2127_v28 = vpop.eup %2126 }
 0x12e   :  { %v280_v31 = vmul.f32 0.0, %v2127_v28 }
 0x18e   :  { %v283_v29 = vpop.permute.xlu0 %282 }
 0x18f   :  { %v285_v30 = vmul.f32 %v2127_v28, %v283_v29 }
 0x191   :  { %287 = vrot.lane.b32.xlu0 %v285_v30, %s2347_s24 }
 0x203   :  { %v288_v32 = vpop.permute.xlu0 %287 }
 0x204   :  { %v2431_v33 = vadd.f32 %v288_v32, %v280_v31 }
 0x206   :  { %2128 = vtanh.f32 %v2431_v33 }
 0x213   :  { %v2129_v43 = vpop.eup %2128 }
 0x214   :  { %293 = vrot.lane.b32.xlu1 %v2129_v43, %s2346_s23 }
 0x286   :  { %v294_v45 = vpop.permute.xlu1 %293 }
 0x287   :  { %v296_v46 = vmul.f32 %v2127_v28, %v294_v45  ;;  %v216_v28 = vpop.f32.mrf.mxu0 }
 0x288   :  { %v217_v32 = vadd.f32 %v2426_v20, %v216_v28 }
 0x289   :  { %298 = vrot.lane.b32.xlu1 %v296_v46, %s2347_s24  ;;  %v218_v29 = vpop.f32.mrf.mxu0 }
 0x2fb   :  { %v299_v47 = vpop.permute.xlu1 %298 }
 0x2fc   :  { %1934 = vmatmul.mubr.msk.f32.vlgmr.msra.gmra.mxu1 %vm300_vm2, %v299_v47 }
 0x2fd   :  { %2012 = vmatpush3.msra.mxu1 %v2493_v13  ;;  %2019 = vmatprep.mubr.msk.f32.mxu1 %vm2348_vm3, %v2345_v0 }
 0x2fe   :  { %2013 = vmatprep.subr.mxu1 %v2345_v0 }
 0x2ff   :  { %2014 = vmatpush3.msra.mxu1 %v2498_v14 }
 0x300   :  { %2015 = vmatprep.subr.mxu1 %v2345_v0 }
 0x301   :  { %2016 = vmatpush3.msra.mxu1 %v2507_v15 }
 0x302   :  { %2017 = vmatprep.subr.mxu1 %v2345_v0 }
 0x303   :  { %2018 = vmatpush3.msra.mxu1 %v2514_v16 }
 0x304   :  { %529 = vmatprep.subr.mxu1 %v2434_v34 }
 0x3bc   :  { %v369_v52 = vpop.f32.mrf.mxu1 }
 0x3bd   :  { %v374_v53 = vadd.f32 %v2475_v50, %v369_v52 }
 0x3be   :  { %v371_v54 = vpop.f32.mrf.mxu1 }
 0x3bf   :  { %2130 = vtanh.f32 %v374_v53  ;;  %v475_v55 = vadd.f32 %v371_v54, %v212_v51  ;;  %v1935_v58 = vmul.f32 -1.442695, %v374_v53 }
 0x3c1   :  { %2132 = vtanh.f32 %v475_v55  ;;  %v1937_v59 = vmul.f32 -1.442695, %v475_v55 }
 0x3c2   :  { %2134 = vpow2.f32 %v1935_v58 }
 0x3c3   :  { %2136 = vpow2.f32 %v1937_v59 }
 0x3cc   :  { %v2131_v56 = vpop.eup %2130 }
 0x3cd   :  { %384 = vrot.lane.b32.xlu0 %v2131_v56, %s2346_s23 }
 0x3ce   :  { %v2133_v57 = vpop.eup %2132 }
 0x3cf   :  { %485 = vrot.lane.b32.xlu1 %v2133_v57, %s2346_s23  ;;  %v2135_v60 = vpop.eup %2134 }
 0x3d0   :  { %v2137_v61 = vpop.eup %2136  ;;  %v378_v62 = vadd.f32 1.0, %v2135_v60 }
 0x3d1   :  { %v479_v63 = vadd.f32 1.0, %v2137_v61 }
 0x3d2   :  { %2138 = vrcp.f32 %v378_v62 }
 0x3d3   :  { %2140 = vrcp.f32 %v479_v63 }
 0x3df   :  { %v2139_v1 = vpop.eup %2138 }
 0x3e0   :  { %v2141_v4 = vpop.eup %2140  ;;  %v382_v7 = vmul.f32 0.0, %v2139_v1 }
 0x3e1   :  { %v483_v10 = vmul.f32 %v2141_v4, %v2431_v33 }
 0x43f   :  { %v385_v2 = vpop.permute.xlu0 %384 }
 0x440   :  { %v387_v3 = vmul.f32 %v2139_v1, %v385_v2 }
 0x441   :  { %v486_v5 = vpop.permute.xlu1 %485 }
 0x442   :  { %389 = vrot.lane.b32.xlu0 %v387_v3, %s2347_s24  ;;  %v488_v6 = vmul.f32 %v2141_v4, %v486_v5 }
 0x444   :  { %490 = vrot.lane.b32.xlu1 %v488_v6, %s2347_s24  ;;  %v78_v6 = vld [vmem:[#allocation3 + $0x38] sm:$0xff] }
 0x445   :  { %1927 = vmatprep.mubr.msk.f32.mxu0 %vm111_vm0, %v78_v6 }
 0x4b4   :  { %v390_v8 = vpop.permute.xlu0 %389 }
 0x4b5   :  { %v2483_v9 = vadd.f32 %v390_v8, %v382_v7  ;;  %v77_v7 = vld [vmem:[#allocation3 + $0x30] sm:$0xff] }
 0x4b6   :  { %v491_v11 = vpop.permute.xlu1 %490  ;;  %220 = vmatmul.mubr.f32.gmra.mxu0 %v77_v7 }
 0x4b7   :  { %2142 = vtanh.f32 %v2483_v9  ;;  %v2487_v12 = vadd.f32 %v491_v11, %v483_v10 }
 0x4b9   :  { %2144 = vtanh.f32 %v2487_v12 }
 0x4c4   :  { %v2143_v17 = vpop.eup %2142 }
 0x4c5   :  { %395 = vrot.lane.b32.xlu0 %v2143_v17, %s2346_s23 }
 0x4c6   :  { %v2145_v18 = vpop.eup %2144 }
 0x4c7   :  { %496 = vrot.lane.b32.xlu1 %v2145_v18, %s2346_s23 }
 0x537   :  { %v396_v22 = vpop.permute.xlu0 %395 }
 0x538   :  { %v398_v23 = vmul.f32 %v2139_v1, %v396_v22 }
 0x539   :  { %v497_v24 = vpop.permute.xlu1 %496 }
 0x53a   :  { %400 = vrot.lane.b32.xlu0 %v398_v23, %s2347_s24  ;;  %v499_v25 = vmul.f32 %v2141_v4, %v497_v24 }
 0x53c   :  { %501 = vrot.lane.b32.xlu1 %v499_v25, %s2347_s24 }
 0x576   :  { %v221_v18 = vpop.f32.mrf.mxu0 }
 0x577   :  { %v222_v23 = vadd.f32 %v2426_v20, %v221_v18 }
 0x578   :  { %v223_v19 = vpop.f32.mrf.mxu0 }
 0x5ac   :  { %v401_v26 = vpop.permute.xlu0 %400 }
 0x5ad   :  { %2020 = vmatmul.mubr.msk.f32.vlgmr.msra.gmra.mxu1 %vm300_vm2, %v401_v26 }
 0x5ae   :  { %530 = vmatpush1.msra.mxu1 %v2436_v35  ;;  %569 = vmatprep.mubr.f32.mxu1 %v2345_v0  ;;  %v502_v27 = vpop.permute.xlu1 %501 }
 0x5af   :  { %531 = vmatprep.subr.mxu1 %v2438_v36 }
 0x5b0   :  { %532 = vmatpush1.msra.mxu1 %v2441_v37 }
 0x5b1   :  { %533 = vmatprep.subr.mxu1 %v2445_v38 }
 0x5b2   :  { %534 = vmatpush1.msra.mxu1 %v2449_v40 }
 0x5b3   :  { %535 = vmatprep.subr.mxu1 %v2453_v41 }
 0x5b4   :  { %536 = vmatpush1.msra.mxu1 %v2457_v42 }
 0x5b5   :  { %1938 = vmatmul.mubr.msk.f32.vlgmr.msra.gmra.mxu1 %vm300_vm2, %v502_v27  ;;  %2022 = vmatprep.subr.mxu1 %v2345_v0 }
 0x5b6   :  { %2023 = vmatpush3.msra.mxu1 %v2493_v13  ;;  %2030 = vmatprep.mubr.msk.f32.mxu1 %vm2348_vm3, %v2345_v0 }
 0x5b7   :  { %2024 = vmatprep.subr.mxu1 %v2345_v0 }
 0x5b8   :  { %2025 = vmatpush3.msra.mxu1 %v2498_v14 }
 0x5b9   :  { %2026 = vmatprep.subr.mxu1 %v2345_v0 }
 0x5ba   :  { %2027 = vmatpush3.msra.mxu1 %v2507_v15 }
 0x5bb   :  { %2028 = vmatprep.subr.mxu1 %v2345_v0 }
 0x5bc   :  { %2029 = vmatpush3.msra.mxu1 %v2514_v16 }
 0x5bd   :  { %732 = vmatprep.subr.mxu1 %v2434_v34 }
 0x66d   :  { %v470_v30 = vpop.f32.mrf.mxu1 }
 0x66f   :  { %v2021_v31 = vpop.f32.mrf.mxu1 }
 0x675   :  { %v571_v33 = vpop.f32.mrf.mxu1 }
 0x676   :  { %v576_v39 = vadd.f32 %v571_v33, %v470_v30 }
 0x677   :  { %v573_v43 = vpop.f32.mrf.mxu1 }
 0x678   :  { %v577_v44 = vadd.f32 %v2475_v50, %v576_v39  ;;  %v678_v45 = vadd.f32 %v573_v43, %v217_v32 }
 0x67a   :  { %2146 = vtanh.f32 %v577_v44  ;;  %v1939_v48 = vmul.f32 -1.442695, %v577_v44  ;;  %v1941_v49 = vmul.f32 -1.442695, %v678_v45 }
 0x67b   :  { %2148 = vtanh.f32 %v678_v45 }
 0x67c   :  { %2150 = vpow2.f32 %v1939_v48 }
 0x67d   :  { %2152 = vpow2.f32 %v1941_v49 }
 0x687   :  { %v2147_v46 = vpop.eup %2146 }
 0x688   :  { %v2149_v47 = vpop.eup %2148  ;;  %587 = vrot.lane.b32.xlu0 %v2147_v46, %s2346_s23 }
 0x689   :  { %688 = vrot.lane.b32.xlu1 %v2149_v47, %s2346_s23  ;;  %v2151_v51 = vpop.eup %2150 }
 0x68a   :  { %v2153_v52 = vpop.eup %2152  ;;  %v581_v53 = vadd.f32 1.0, %v2151_v51 }
 0x68b   :  { %v682_v54 = vadd.f32 1.0, %v2153_v52 }
 0x68c   :  { %2154 = vrcp.f32 %v581_v53 }
 0x68d   :  { %2156 = vrcp.f32 %v682_v54 }
 0x699   :  { %v2155_v55 = vpop.eup %2154 }
 0x69a   :  { %v2157_v57 = vpop.eup %2156  ;;  %v585_v61 = vmul.f32 %v2155_v55, %v2483_v9 }
 0x69b   :  { %v686_v63 = vmul.f32 %v2157_v57, %v2487_v12 }
 0x6fa   :  { %v588_v56 = vpop.permute.xlu0 %587 }
 0x6fb   :  { %v590_v58 = vmul.f32 %v2155_v55, %v588_v56  ;;  %v689_v59 = vpop.permute.xlu1 %688 }
 0x6fc   :  { %v691_v60 = vmul.f32 %v2157_v57, %v689_v59 }
 0x6fd   :  { %592 = vrot.lane.b32.xlu0 %v590_v58, %s2347_s24 }
 0x6fe   :  { %693 = vrot.lane.b32.xlu1 %v691_v60, %s2347_s24  ;;  %v80_v60 = vld [vmem:[#allocation3 + $0x48] sm:$0xff] }
 0x6ff   :  { %1928 = vmatprep.mubr.msk.f32.mxu0 %vm111_vm0, %v80_v60 }
 0x76f   :  { %v593_v62 = vpop.permute.xlu0 %592 }
 0x770   :  { %v2554_v1 = vadd.f32 %v593_v62, %v585_v61  ;;  %v694_v2 = vpop.permute.xlu1 %693  ;;  %v79_v61 = vld [vmem:[#allocation3 + $0x40] sm:$0xff] }
 0x771   :  { %v2556_v3 = vadd.f32 %v694_v2, %v686_v63  ;;  %225 = vmatmul.mubr.f32.gmra.mxu0 %v79_v61 }
 0x772   :  { %2158 = vtanh.f32 %v2554_v1 }
 0x773   :  { %2160 = vtanh.f32 %v2556_v3 }
 0x77f   :  { %v2159_v4 = vpop.eup %2158 }
 0x780   :  { %v2161_v5 = vpop.eup %2160  ;;  %598 = vrot.lane.b32.xlu0 %v2159_v4, %s2346_s23 }
 0x781   :  { %699 = vrot.lane.b32.xlu1 %v2161_v5, %s2346_s23 }
 0x7f2   :  { %v599_v8 = vpop.permute.xlu0 %598 }
 0x7f3   :  { %v601_v9 = vmul.f32 %v2155_v55, %v599_v8  ;;  %v700_v10 = vpop.permute.xlu1 %699 }
 0x7f4   :  { %v702_v11 = vmul.f32 %v2157_v57, %v700_v10 }
 0x7f5   :  { %603 = vrot.lane.b32.xlu0 %v601_v9, %s2347_s24 }
 0x7f6   :  { %704 = vrot.lane.b32.xlu1 %v702_v11, %s2347_s24 }
 0x831   :  { %v226_v5 = vpop.f32.mrf.mxu0 }
 0x832   :  { %v227_v9 = vadd.f32 %v2426_v20, %v226_v5 }
 0x833   :  { %v228_v6 = vpop.f32.mrf.mxu0 }
 0x867   :  { %v604_v12 = vpop.permute.xlu0 %603 }
 0x868   :  { %2031 = vmatmul.mubr.msk.f32.vlgmr.msra.gmra.mxu1 %vm300_vm2, %v604_v12  ;;  %v705_v17 = vpop.permute.xlu1 %704 }
 0x869   :  { %733 = vmatpush1.msra.mxu1 %v2436_v35  ;;  %772 = vmatprep.mubr.f32.mxu1 %v2345_v0 }
 0x86a   :  { %734 = vmatprep.subr.mxu1 %v2438_v36 }
 0x86b   :  { %735 = vmatpush1.msra.mxu1 %v2441_v37 }
 0x86c   :  { %736 = vmatprep.subr.mxu1 %v2445_v38 }
 0x86d   :  { %737 = vmatpush1.msra.mxu1 %v2449_v40 }
 0x86e   :  { %738 = vmatprep.subr.mxu1 %v2453_v41 }
 0x86f   :  { %739 = vmatpush1.msra.mxu1 %v2457_v42 }
 0x870   :  { %1942 = vmatmul.mubr.msk.f32.vlgmr.msra.gmra.mxu1 %vm300_vm2, %v705_v17  ;;  %2033 = vmatprep.subr.mxu1 %v2345_v0 }
 0x871   :  { %2034 = vmatpush3.msra.mxu1 %v2493_v13  ;;  %2041 = vmatprep.mubr.msk.f32.mxu1 %vm2348_vm3, %v2345_v0 }
 0x872   :  { %2035 = vmatprep.subr.mxu1 %v2345_v0 }
 0x873   :  { %2036 = vmatpush3.msra.mxu1 %v2498_v14 }
 0x874   :  { %2037 = vmatprep.subr.mxu1 %v2345_v0 }
 0x875   :  { %2038 = vmatpush3.msra.mxu1 %v2507_v15 }
 0x876   :  { %2039 = vmatprep.subr.mxu1 %v2345_v0 }
 0x877   :  { %2040 = vmatpush3.msra.mxu1 %v2514_v16 }
 0x878   :  { %935 = vmatprep.subr.mxu1 %v2434_v34 }
 0x928   :  { %v673_v21 = vpop.f32.mrf.mxu1 }
 0x92a   :  { %v2032_v22 = vpop.f32.mrf.mxu1 }
 0x930   :  { %v774_v24 = vpop.f32.mrf.mxu1 }
 0x931   :  { %v779_v25 = vadd.f32 %v774_v24, %v673_v21 }
 0x932   :  { %v776_v26 = vpop.f32.mrf.mxu1 }
 0x933   :  { %v780_v27 = vadd.f32 %v2475_v50, %v779_v25  ;;  %v881_v28 = vadd.f32 %v776_v26, %v222_v23 }
 0x935   :  { %2162 = vtanh.f32 %v780_v27  ;;  %v1943_v31 = vmul.f32 -1.442695, %v780_v27  ;;  %v1945_v32 = vmul.f32 -1.442695, %v881_v28 }
 0x936   :  { %2164 = vtanh.f32 %v881_v28 }
 0x937   :  { %2166 = vpow2.f32 %v1943_v31 }
 0x938   :  { %2168 = vpow2.f32 %v1945_v32 }
 0x942   :  { %v2163_v29 = vpop.eup %2162 }
 0x943   :  { %v2165_v30 = vpop.eup %2164  ;;  %790 = vrot.lane.b32.xlu0 %v2163_v29, %s2346_s23 }
 0x944   :  { %891 = vrot.lane.b32.xlu1 %v2165_v30, %s2346_s23  ;;  %v2167_v33 = vpop.eup %2166 }
 0x945   :  { %v2169_v39 = vpop.eup %2168  ;;  %v784_v43 = vadd.f32 1.0, %v2167_v33 }
 0x946   :  { %v885_v44 = vadd.f32 1.0, %v2169_v39 }
 0x947   :  { %2170 = vrcp.f32 %v784_v43 }
 0x948   :  { %2172 = vrcp.f32 %v885_v44 }
 0x954   :  { %v2171_v45 = vpop.eup %2170 }
 0x955   :  { %v2173_v47 = vpop.eup %2172  ;;  %v788_v52 = vmul.f32 %v2171_v45, %v2554_v1 }
 0x956   :  { %v889_v54 = vmul.f32 %v2173_v47, %v2556_v3 }
 0x9b5   :  { %v791_v46 = vpop.permute.xlu0 %790 }
 0x9b6   :  { %v793_v48 = vmul.f32 %v2171_v45, %v791_v46  ;;  %v892_v49 = vpop.permute.xlu1 %891 }
 0x9b7   :  { %v894_v51 = vmul.f32 %v2173_v47, %v892_v49  ;;  %v81_v49 = vld [vmem:[#allocation3 + $0x50] sm:$0xff] }
 0x9b8   :  { %795 = vrot.lane.b32.xlu0 %v793_v48, %s2347_s24  ;;  %v82_v48 = vld [vmem:[#allocation3 + $0x58] sm:$0xff] }
 0x9b9   :  { %896 = vrot.lane.b32.xlu1 %v894_v51, %s2347_s24  ;;  %v84_v51 = vld [vmem:[#allocation3 + $0x68] sm:$0xff]  ;;  %1929 = vmatprep.mubr.msk.f32.mxu0 %vm111_vm0, %v82_v48 }
 0x9ba   :  { %230 = vmatmul.mubr.f32.gmra.mxu0 %v81_v49 }
 0x9bb   :  { %1930 = vmatprep.mubr.msk.f32.mxu0 %vm111_vm0, %v84_v51 }
 0xa2a   :  { %v796_v53 = vpop.permute.xlu0 %795 }
 0xa2b   :  { %v2594_v55 = vadd.f32 %v796_v53, %v788_v52  ;;  %v897_v56 = vpop.permute.xlu1 %896  ;;  %v83_v52 = vld [vmem:[#allocation3 + $0x60] sm:$0xff]  ;;  %v86_v53 = vld [vmem:[#allocation3 + $0x78] sm:$0xff] }
 0xa2c   :  { %v2596_v57 = vadd.f32 %v897_v56, %v889_v54  ;;  %235 = vmatmul.mubr.f32.gmra.mxu0 %v83_v52  ;;  %v85_v54 = vld [vmem:[#allocation3 + $0x70] sm:$0xff] }
 0xa2d   :  { %2174 = vtanh.f32 %v2594_v55  ;;  %1931 = vmatprep.mubr.msk.f32.mxu0 %vm111_vm0, %v86_v53 }
 0xa2e   :  { %2176 = vtanh.f32 %v2596_v57 }
 0xa30   :  { %240 = vmatmul.mubr.f32.gmra.mxu0 %v85_v54 }
 0xa31   :  { %1178 = vmatprep.mubr.f32.mxu0 %v2345_v0 }
 0xa3a   :  { %v2175_v58 = vpop.eup %2174 }
 0xa3b   :  { %v2177_v59 = vpop.eup %2176  ;;  %801 = vrot.lane.b32.xlu0 %v2175_v58, %s2346_s23 }
 0xa3c   :  { %902 = vrot.lane.b32.xlu1 %v2177_v59, %s2346_s23 }
 0xa7a   :  { %v231_v61 = vpop.f32.mrf.mxu0 }
 0xaad   :  { %v802_v62 = vpop.permute.xlu0 %801 }
 0xaae   :  { %v804_v63 = vmul.f32 %v2171_v45, %v802_v62  ;;  %v903_v1 = vpop.permute.xlu1 %902  ;;  %v233_v62 = vpop.f32.mrf.mxu0 }
 0xaaf   :  { %v905_v2 = vmul.f32 %v2173_v47, %v903_v1 }
 0xab0   :  { %806 = vrot.lane.b32.xlu0 %v804_v63, %s2347_s24 }
 0xab1   :  { %907 = vrot.lane.b32.xlu1 %v905_v2, %s2347_s24 }
 0xaec   :  { %v2648_v63 = vpop.f32.mrf.mxu0 }
 0xaee   :  { %v238_v1 = vpop.f32.mrf.mxu0 }
 0xaf0   :  { %v2650_v2 = vpop.f32.mrf.mxu0 }
 0xb22   :  { %v807_v3 = vpop.permute.xlu0 %806 }
 0xb23   :  { %2042 = vmatmul.mubr.msk.f32.vlgmr.msra.gmra.mxu1 %vm300_vm2, %v807_v3  ;;  %v908_v4 = vpop.permute.xlu1 %907  ;;  %v243_v3 = vpop.f32.mrf.mxu0 }
 0xb24   :  { %936 = vmatpush1.msra.mxu1 %v2436_v35  ;;  %975 = vmatprep.mubr.f32.mxu1 %v2345_v0 }
 0xb25   :  { %937 = vmatprep.subr.mxu1 %v2438_v36 }
 0xb26   :  { %938 = vmatpush1.msra.mxu1 %v2441_v37 }
 0xb27   :  { %939 = vmatprep.subr.mxu1 %v2445_v38 }
 0xb28   :  { %940 = vmatpush1.msra.mxu1 %v2449_v40 }
 0xb29   :  { %941 = vmatprep.subr.mxu1 %v2453_v41 }
 0xb2a   :  { %942 = vmatpush1.msra.mxu1 %v2457_v42 }
 0xb2b   :  { %1946 = vmatmul.mubr.msk.f32.vlgmr.msra.gmra.mxu1 %vm300_vm2, %v908_v4  ;;  %2044 = vmatprep.subr.mxu1 %v2345_v0 }
 0xb2c   :  { %2045 = vmatpush3.msra.mxu1 %v2493_v13  ;;  %2052 = vmatprep.mubr.msk.f32.mxu1 %vm2348_vm3, %v2345_v0 }
 0xb2d   :  { %2046 = vmatprep.subr.mxu1 %v2345_v0 }
 0xb2e   :  { %2047 = vmatpush3.msra.mxu1 %v2498_v14 }
 0xb2f   :  { %2048 = vmatprep.subr.mxu1 %v2345_v0 }
 0xb30   :  { %2049 = vmatpush3.msra.mxu1 %v2507_v15 }
 0xb31   :  { %2050 = vmatprep.subr.mxu1 %v2345_v0 }
 0xb32   :  { %2051 = vmatpush3.msra.mxu1 %v2514_v16 }
 0xb33   :  { %2055 = vmatprep.subr.mxu1 %v2345_v0 }
 0xbe3   :  { %v876_v7 = vpop.f32.mrf.mxu1 }
 0xbe5   :  { %v2043_v8 = vpop.f32.mrf.mxu1 }
 0xbe6   :  { %v232_v8 = vadd.f32 %v2426_v20, %v231_v61 }
 0xbeb   :  { %v977_v10 = vpop.f32.mrf.mxu1 }
 0xbec   :  { %v982_v11 = vadd.f32 %v977_v10, %v876_v7 }
 0xbed   :  { %v979_v12 = vpop.f32.mrf.mxu1 }
 0xbee   :  { %v983_v17 = vadd.f32 %v2475_v50, %v982_v11  ;;  %v1084_v18 = vadd.f32 %v979_v12, %v227_v9 }
 0xbf0   :  { %2178 = vtanh.f32 %v983_v17  ;;  %v1947_v22 = vmul.f32 -1.442695, %v983_v17  ;;  %v1949_v23 = vmul.f32 -1.442695, %v1084_v18 }
 0xbf1   :  { %2180 = vtanh.f32 %v1084_v18 }
 0xbf2   :  { %2182 = vpow2.f32 %v1947_v22 }
 0xbf3   :  { %2184 = vpow2.f32 %v1949_v23 }
 0xbfd   :  { %v2179_v19 = vpop.eup %2178 }
 0xbfe   :  { %v2181_v21 = vpop.eup %2180  ;;  %993 = vrot.lane.b32.xlu0 %v2179_v19, %s2346_s23 }
 0xbff   :  { %1094 = vrot.lane.b32.xlu1 %v2181_v21, %s2346_s23  ;;  %v2183_v24 = vpop.eup %2182 }
 0xc00   :  { %v2185_v25 = vpop.eup %2184  ;;  %v987_v26 = vadd.f32 1.0, %v2183_v24 }
 0xc01   :  { %v1088_v27 = vadd.f32 1.0, %v2185_v25 }
 0xc02   :  { %2186 = vrcp.f32 %v987_v26 }
 0xc03   :  { %2188 = vrcp.f32 %v1088_v27 }
 0xc0f   :  { %v2187_v28 = vpop.eup %2186 }
 0xc10   :  { %v2189_v30 = vpop.eup %2188  ;;  %v991_v39 = vmul.f32 %v2187_v28, %v2594_v55 }
 0xc11   :  { %v1092_v44 = vmul.f32 %v2189_v30, %v2596_v57 }
 0xc70   :  { %v994_v29 = vpop.permute.xlu0 %993 }
 0xc71   :  { %v996_v31 = vmul.f32 %v2187_v28, %v994_v29  ;;  %v1095_v32 = vpop.permute.xlu1 %1094 }
 0xc72   :  { %v1097_v33 = vmul.f32 %v2189_v30, %v1095_v32 }
 0xc73   :  { %998 = vrot.lane.b32.xlu0 %v996_v31, %s2347_s24 }
 0xc74   :  { %1099 = vrot.lane.b32.xlu1 %v1097_v33, %s2347_s24 }
 0xce5   :  { %v999_v43 = vpop.permute.xlu0 %998 }
 0xce6   :  { %v2634_v45 = vadd.f32 %v999_v43, %v991_v39  ;;  %v1100_v46 = vpop.permute.xlu1 %1099 }
 0xce7   :  { %v2636_v47 = vadd.f32 %v1100_v46, %v1092_v44 }
 0xce8   :  { %2190 = vtanh.f32 %v2634_v45 }
 0xce9   :  { %2192 = vtanh.f32 %v2636_v47 }
 0xcf5   :  { %v2191_v55 = vpop.eup %2190 }
 0xcf6   :  { %v2193_v56 = vpop.eup %2192  ;;  %1004 = vrot.lane.b32.xlu0 %v2191_v55, %s2346_s23  ;;  %v237_v55 = vadd.f32 %v2426_v20, %v2648_v63 }
 0xcf7   :  { %1105 = vrot.lane.b32.xlu1 %v2193_v56, %s2346_s23 }
 0xd68   :  { %v1005_v57 = vpop.permute.xlu0 %1004 }
 0xd69   :  { %v1007_v58 = vmul.f32 %v2187_v28, %v1005_v57  ;;  %v1106_v59 = vpop.permute.xlu1 %1105 }
 0xd6a   :  { %v1108_v60 = vmul.f32 %v2189_v30, %v1106_v59 }
 0xd6b   :  { %1009 = vrot.lane.b32.xlu0 %v1007_v58, %s2347_s24 }
 0xd6c   :  { %1110 = vrot.lane.b32.xlu1 %v1108_v60, %s2347_s24 }
 0xddd   :  { %v1010_v4 = vpop.permute.xlu0 %1009 }
 0xdde   :  { %v1111_v5 = vpop.permute.xlu1 %1110  ;;  %2053 = vmatmul.mubr.msk.f32.vlgmr.msra.gmra.mxu1 %vm300_vm2, %v1010_v4 }
 0xddf   :  { %1950 = vmatmul.mubr.msk.f32.vlgmr.msra.gmra.mxu0 %vm300_vm2, %v1111_v5  ;;  %2056 = vmatpush3.msra.mxu1 %v2493_v13 }
 0xde0   :  { %1342 = vmatpush1.msra.mxu0 %v2436_v35  ;;  %2057 = vmatprep.subr.mxu1 %v2345_v0 }
 0xde1   :  { %1343 = vmatprep.subr.mxu0 %v2438_v36  ;;  %2058 = vmatpush3.msra.mxu1 %v2498_v14 }
 0xde2   :  { %1344 = vmatpush1.msra.mxu0 %v2441_v37  ;;  %2059 = vmatprep.subr.mxu1 %v2345_v0 }
 0xde3   :  { %1345 = vmatprep.subr.mxu0 %v2445_v38  ;;  %2060 = vmatpush3.msra.mxu1 %v2507_v15 }
 0xde4   :  { %1346 = vmatpush1.msra.mxu0 %v2449_v40  ;;  %2061 = vmatprep.subr.mxu1 %v2345_v0 }
 0xde5   :  { %1347 = vmatprep.subr.mxu0 %v2453_v41  ;;  %2062 = vmatpush3.msra.mxu1 %v2514_v16 }
 0xde6   :  { %2063 = vmatprep.mubr.msk.f32.mxu1 %vm2348_vm3, %v2345_v0  ;;  %1348 = vmatpush1.msra.mxu0 %v2457_v42 }
 0xde7   :  { %1381 = vmatprep.mubr.f32.mxu0 %v2345_v0  ;;  %2066 = vmatprep.subr.mxu1 %v2345_v0 }
 0xde8   :  { %1544 = vmatprep.subr.mxu0 %v2434_v34 }
 0xe9e   :  { %v1079_v6 = vpop.f32.mrf.mxu1 }
 0xe9f   :  { %v1180_v7 = vpop.f32.mrf.mxu0 }
 0xea0   :  { %v1185_v9 = vadd.f32 %v1180_v7, %v1079_v6  ;;  %v2054_v10 = vpop.f32.mrf.mxu1 }
 0xea1   :  { %v1182_v11 = vpop.f32.mrf.mxu0 }
 0xea2   :  { %v1186_v12 = vadd.f32 %v2475_v50, %v1185_v9  ;;  %v1287_v17 = vadd.f32 %v1182_v11, %v232_v8 }
 0xea4   :  { %2194 = vtanh.f32 %v1186_v12  ;;  %v1951_v21 = vmul.f32 -1.442695, %v1186_v12  ;;  %v1953_v34 = vmul.f32 -1.442695, %v1287_v17 }
 0xea5   :  { %2196 = vtanh.f32 %v1287_v17 }
 0xea6   :  { %2198 = vpow2.f32 %v1951_v21 }
 0xea7   :  { %2200 = vpow2.f32 %v1953_v34 }
 0xeb1   :  { %v2195_v18 = vpop.eup %2194 }
 0xeb2   :  { %v2197_v19 = vpop.eup %2196  ;;  %1196 = vrot.lane.b32.xlu0 %v2195_v18, %s2346_s23 }
 0xeb3   :  { %1297 = vrot.lane.b32.xlu1 %v2197_v19, %s2346_s23  ;;  %v2199_v22 = vpop.eup %2198 }
 0xeb4   :  { %v2201_v23 = vpop.eup %2200  ;;  %v1190_v24 = vadd.f32 1.0, %v2199_v22 }
 0xeb5   :  { %v1291_v25 = vadd.f32 1.0, %v2201_v23 }
 0xeb6   :  { %2202 = vrcp.f32 %v1190_v24 }
 0xeb7   :  { %2204 = vrcp.f32 %v1291_v25 }
 0xec3   :  { %v2203_v26 = vpop.eup %2202 }
 0xec4   :  { %v2205_v28 = vpop.eup %2204  ;;  %v1194_v32 = vmul.f32 %v2203_v26, %v2634_v45 }
 0xec5   :  { %v1295_v33 = vmul.f32 %v2205_v28, %v2636_v47 }
 0xf24   :  { %v1197_v27 = vpop.permute.xlu0 %1196 }
 0xf25   :  { %v1298_v29 = vpop.permute.xlu1 %1297  ;;  %v1199_v30 = vmul.f32 %v2203_v26, %v1197_v27 }
 0xf26   :  { %v1300_v31 = vmul.f32 %v2205_v28, %v1298_v29 }
 0xf27   :  { %1201 = vrot.lane.b32.xlu0 %v1199_v30, %s2347_s24 }
 0xf28   :  { %1302 = vrot.lane.b32.xlu1 %v1300_v31, %s2347_s24 }
 0xf99   :  { %v1202_v39 = vpop.permute.xlu0 %1201 }
 0xf9a   :  { %v1303_v43 = vpop.permute.xlu1 %1302  ;;  %v2681_v44 = vadd.f32 %v1202_v39, %v1194_v32 }
 0xf9b   :  { %v2683_v46 = vadd.f32 %v1303_v43, %v1295_v33 }
 0xf9c   :  { %2206 = vtanh.f32 %v2681_v44 }
 0xf9d   :  { %2208 = vtanh.f32 %v2683_v46 }
 0xfa9   :  { %v2207_v48 = vpop.eup %2206 }
 0xfaa   :  { %v2209_v49 = vpop.eup %2208  ;;  %1207 = vrot.lane.b32.xlu0 %v2207_v48, %s2346_s23 }
 0xfab   :  { %1308 = vrot.lane.b32.xlu1 %v2209_v49, %s2346_s23 }
0x101c   :  { %v1208_v51 = vpop.permute.xlu0 %1207 }
0x101d   :  { %v1309_v45 = vpop.permute.xlu1 %1308  ;;  %v1210_v52 = vmul.f32 %v2203_v26, %v1208_v51 }
0x101e   :  { %v1311_v47 = vmul.f32 %v2205_v28, %v1309_v45 }
0x101f   :  { %1212 = vrot.lane.b32.xlu0 %v1210_v52, %s2347_s24 }
0x1020   :  { %1313 = vrot.lane.b32.xlu1 %v1311_v47, %s2347_s24 }
0x1091   :  { %v1213_v53 = vpop.permute.xlu0 %1212 }
0x1092   :  { %v1314_v54 = vpop.permute.xlu1 %1313  ;;  %2064 = vmatmul.mubr.msk.f32.vlgmr.msra.gmra.mxu1 %vm300_vm2, %v1213_v53 }
0x1093   :  { %1954 = vmatmul.mubr.msk.f32.vlgmr.msra.gmra.mxu0 %vm300_vm2, %v1314_v54  ;;  %2067 = vmatpush3.msra.mxu1 %v2493_v13 }
0x1094   :  { %1545 = vmatpush1.msra.mxu0 %v2436_v35  ;;  %2068 = vmatprep.subr.mxu1 %v2345_v0 }
0x1095   :  { %1546 = vmatprep.subr.mxu0 %v2438_v36  ;;  %2069 = vmatpush3.msra.mxu1 %v2498_v14 }
0x1096   :  { %1547 = vmatpush1.msra.mxu0 %v2441_v37  ;;  %2070 = vmatprep.subr.mxu1 %v2345_v0 }
0x1097   :  { %1548 = vmatprep.subr.mxu0 %v2445_v38  ;;  %2071 = vmatpush3.msra.mxu1 %v2507_v15 }
0x1098   :  { %1549 = vmatpush1.msra.mxu0 %v2449_v40  ;;  %2072 = vmatprep.subr.mxu1 %v2345_v0 }
0x1099   :  { %1550 = vmatprep.subr.mxu0 %v2453_v41  ;;  %1584 = vmatprep.mubr.f32.mxu0 %v2345_v0 }
0x109a   :  { %1551 = vmatpush1.msra.mxu0 %v2457_v42  ;;  %2073 = vmatpush3.msra.mxu1 %v2514_v16 }
0x109b   :  { %2074 = vmatprep.mubr.msk.f32.mxu1 %vm2348_vm3, %v2345_v0  ;;  %2077 = vmatprep.subr.mxu1 %v2345_v0 }
0x109c   :  { %2088 = vmatprep.subr.mxu0 %v2345_v0 }
0x1152   :  { %v1282_v36 = vpop.f32.mrf.mxu1 }
0x1153   :  { %v1383_v38 = vpop.f32.mrf.mxu0 }
0x1154   :  { %v1388_v56 = vadd.f32 %v1383_v38, %v1282_v36  ;;  %v2065_v41 = vpop.f32.mrf.mxu1 }
0x1155   :  { %v1385_v57 = vpop.f32.mrf.mxu0 }
0x1156   :  { %v1389_v58 = vadd.f32 %v2475_v50, %v1388_v56  ;;  %v1490_v59 = vadd.f32 %v1385_v57, %v237_v55 }
0x1158   :  { %2210 = vtanh.f32 %v1389_v58  ;;  %v1955_v62 = vmul.f32 -1.442695, %v1389_v58  ;;  %v1957_v1 = vmul.f32 -1.442695, %v1490_v59 }
0x1159   :  { %2212 = vtanh.f32 %v1490_v59 }
0x115a   :  { %2214 = vpow2.f32 %v1955_v62 }
0x115b   :  { %2216 = vpow2.f32 %v1957_v1 }
0x1165   :  { %v2211_v60 = vpop.eup %2210 }
0x1166   :  { %v2213_v61 = vpop.eup %2212  ;;  %1399 = vrot.lane.b32.xlu0 %v2211_v60, %s2346_s23 }
0x1167   :  { %1500 = vrot.lane.b32.xlu1 %v2213_v61, %s2346_s23  ;;  %v2215_v3 = vpop.eup %2214 }
0x1168   :  { %v2217_v20 = vpop.eup %2216  ;;  %v1393_v63 = vadd.f32 1.0, %v2215_v3 }
0x1169   :  { %v1494_v4 = vadd.f32 1.0, %v2217_v20 }
0x116a   :  { %2218 = vrcp.f32 %v1393_v63 }
0x116b   :  { %2220 = vrcp.f32 %v1494_v4  ;;  %v2251_v4 = vld [vmem:[%s2805_s5] ss:$0 sm:$0xff] }
0x1177   :  { %v2219_v5 = vpop.eup %2218 }
0x1178   :  { %v2221_v7 = vpop.eup %2220  ;;  %v1397_v11 = vmul.f32 %v2219_v5, %v2681_v44 }
0x1179   :  { %v1498_v12 = vmul.f32 %v2221_v7, %v2683_v46 }
0x11d8   :  { %v1400_v6 = vpop.permute.xlu0 %1399 }
0x11d9   :  { %v1501_v8 = vpop.permute.xlu1 %1500  ;;  %v1402_v9 = vmul.f32 %v2219_v5, %v1400_v6 }
0x11da   :  { %v1503_v10 = vmul.f32 %v2221_v7, %v1501_v8 }
0x11db   :  { %1404 = vrot.lane.b32.xlu0 %v1402_v9, %s2347_s24 }
0x11dc   :  { %1505 = vrot.lane.b32.xlu1 %v1503_v10, %s2347_s24 }
0x124d   :  { %v1405_v17 = vpop.permute.xlu0 %1404 }
0x124e   :  { %v1506_v18 = vpop.permute.xlu1 %1505  ;;  %v2721_v19 = vadd.f32 %v1405_v17, %v1397_v11 }
0x124f   :  { %v2723_v21 = vadd.f32 %v1506_v18, %v1498_v12 }
0x1250   :  { %2222 = vtanh.f32 %v2721_v19 }
0x1251   :  { %2224 = vtanh.f32 %v2723_v21 }
0x125d   :  { %v2223_v34 = vpop.eup %2222 }
0x125e   :  { %v2225_v22 = vpop.eup %2224  ;;  %1410 = vrot.lane.b32.xlu0 %v2223_v34, %s2346_s23  ;;  %v1820_v34 = vld [vmem:[%s2806_s6 + $0x10] sm:$0xff] }
0x125f   :  { %1511 = vrot.lane.b32.xlu1 %v2225_v22, %s2346_s23  ;;  %v1819_v22 = vld [vmem:[%s2806_s6 + $0x8] sm:$0xff] }
0x12d0   :  { %v1411_v23 = vpop.permute.xlu0 %1410 }
0x12d1   :  { %v1512_v24 = vpop.permute.xlu1 %1511  ;;  %v1413_v25 = vmul.f32 %v2219_v5, %v1411_v23  ;;  %v1818_v23 = vld [vmem:[%s2806_s6] sm:$0xff] }
0x12d2   :  { %v1514_v26 = vmul.f32 %v2221_v7, %v1512_v24 }
0x12d3   :  { %1415 = vrot.lane.b32.xlu0 %v1413_v25, %s2347_s24 }
0x12d4   :  { %1516 = vrot.lane.b32.xlu1 %v1514_v26, %s2347_s24 }
0x1345   :  { %v1416_v27 = vpop.permute.xlu0 %1415 }
0x1346   :  { %v1517_v28 = vpop.permute.xlu1 %1516  ;;  %2075 = vmatmul.mubr.msk.f32.vlgmr.msra.gmra.mxu1 %vm300_vm2, %v1416_v27 }
0x1347   :  { %1958 = vmatmul.mubr.msk.f32.vlgmr.msra.gmra.mxu0 %vm300_vm2, %v1517_v28  ;;  %2078 = vmatpush3.msra.mxu1 %v2493_v13  ;;  %v1964_v28 = vld [vmem:[%s2807_s7] ss:$0 sm:$0xff] }
0x1348   :  { %2089 = vmatpush3.msra.mxu0 %v2436_v35  ;;  %2079 = vmatprep.subr.mxu1 %v2345_v0 }
0x1349   :  { %2090 = vmatprep.subr.mxu0 %v2345_v0  ;;  %2080 = vmatpush3.msra.mxu1 %v2498_v14 }
0x134a   :  { %2091 = vmatpush3.msra.mxu0 %v2441_v37  ;;  %2081 = vmatprep.subr.mxu1 %v2345_v0 }
0x134b   :  { %2092 = vmatprep.subr.mxu0 %v2345_v0  ;;  %2082 = vmatpush3.msra.mxu1 %v2507_v15 }
0x134c   :  { %2093 = vmatpush3.msra.mxu0 %v2449_v40  ;;  %2083 = vmatprep.subr.mxu1 %v2345_v0  ;;  %v2250_v40 = vld [vmem:[%s2802_s2] ss:$0 sm:$0xff] }
0x134d   :  { %2094 = vmatprep.subr.mxu0 %v2345_v0  ;;  %2096 = vmatprep.mubr.msk.f32.mxu0 %vm2348_vm3, %v2345_v0  ;;  %v242_v13 = vadd.f32 %v2250_v40, %v2650_v2 }
0x134e   :  { %2095 = vmatpush3.msra.mxu0 %v2457_v42  ;;  %2084 = vmatpush3.msra.mxu1 %v2514_v16 }
0x134f   :  { %2085 = vmatprep.mubr.msk.f32.mxu1 %vm2348_vm3, %v2345_v0  ;;  %2099 = vmatprep.subr.mxu1 %v2345_v0 }
0x1406   :  { %v1485_v35 = vpop.f32.mrf.mxu1 }
0x1407   :  { %v1586_v37 = vpop.f32.mrf.mxu0 }
0x1408   :  { %v1591_v14 = vadd.f32 %v1586_v37, %v1485_v35  ;;  %v2076_v15 = vpop.f32.mrf.mxu1 }
0x1409   :  { %v1588_v29 = vpop.f32.mrf.mxu0 }
0x140a   :  { %v1592_v42 = vadd.f32 %v2475_v50, %v1591_v14  ;;  %v1693_v30 = vadd.f32 %v1588_v29, %v242_v13 }
0x140c   :  { %2226 = vtanh.f32 %v1592_v42  ;;  %v1959_v32 = vmul.f32 -1.442695, %v1592_v42  ;;  %v1961_v33 = vmul.f32 -1.442695, %v1693_v30 }
0x140d   :  { %2228 = vtanh.f32 %v1693_v30 }
0x140e   :  { %2230 = vpow2.f32 %v1959_v32 }
0x140f   :  { %2232 = vpow2.f32 %v1961_v33 }
0x1419   :  { %v2227_v16 = vpop.eup %2226 }
0x141a   :  { %v2229_v31 = vpop.eup %2228  ;;  %1602 = vrot.lane.b32.xlu0 %v2227_v16, %s2346_s23 }
0x141b   :  { %1703 = vrot.lane.b32.xlu1 %v2229_v31, %s2346_s23  ;;  %v2231_v39 = vpop.eup %2230 }
0x141c   :  { %v2233_v2 = vpop.eup %2232  ;;  %v1596_v43 = vadd.f32 1.0, %v2231_v39 }
0x141d   :  { %v1697_v44 = vadd.f32 1.0, %v2233_v2 }
0x141e   :  { %2234 = vrcp.f32 %v1596_v43 }
0x141f   :  { %2236 = vrcp.f32 %v1697_v44 }
0x142b   :  { %v2235_v50 = vpop.eup %2234 }
0x142c   :  { %v2237_v48 = vpop.eup %2236  ;;  %v1600_v52 = vmul.f32 %v2235_v50, %v2721_v19 }
0x142d   :  { %v1701_v47 = vmul.f32 %v2237_v48, %v2723_v21  ;;  %v1821_v21 = vld [vmem:[%s2806_s6 + $0x18] sm:$0xff]  ;;  %s1912_s6 = sshll.u32 %s2349_s0, 4  ;;  %s1913_s6 = int_to_ptr.vmem [resolvable:$true] %s1912_s6 }
0x142e   :  { %s2312_s3 = scalar_lea.vmem %s1913_s6, 128  ;;  %p2317_p2 = scmp.lt.s32.totalorder %s1913_s6, %s1913_s6 }
0x142f   :  { %p2313_p1 = scmp.ne.s32.totalorder %s1913_s6, %s2312_s3  ;;  %p2318_p3 = scmp.lt.s32.totalorder %s2312_s3, %s2312_s3 }
0x1431   :  { %p2319_p4 = por %p2318_p3, %p2317_p2 }
0x1433   :  { %p2320_p5 = pnand %p2319_p4, %p2313_p1 }
0x148c   :  { %v1603_v46 = vpop.permute.xlu0 %1602 }
0x148d   :  { %v1704_v49 = vpop.permute.xlu1 %1703  ;;  %v1605_v51 = vmul.f32 %v2235_v50, %v1603_v46 }
0x148e   :  { %v1706_v45 = vmul.f32 %v2237_v48, %v1704_v49 }
0x148f   :  { %1607 = vrot.lane.b32.xlu0 %v1605_v51, %s2347_s24 }
0x1490   :  { %1708 = vrot.lane.b32.xlu1 %v1706_v45, %s2347_s24 }
0x1501   :  { %v1608_v53 = vpop.permute.xlu0 %1607 }
0x1502   :  { %v1709_v54 = vpop.permute.xlu1 %1708  ;;  %v1610_v36 = vadd.f32 %v1608_v53, %v1600_v52 }
0x1503   :  { %v1711_v38 = vadd.f32 %v1709_v54, %v1701_v47 }
0x1504   :  { %2238 = vtanh.f32 %v1610_v36 }
0x1505   :  { %2240 = vtanh.f32 %v1711_v38 }
0x1511   :  { %v2239_v55 = vpop.eup %2238 }
0x1512   :  { %v2241_v56 = vpop.eup %2240  ;;  %1613 = vrot.lane.b32.xlu0 %v2239_v55, %s2346_s23 }
0x1513   :  { %1714 = vrot.lane.b32.xlu1 %v2241_v56, %s2346_s23 }
0x1584   :  { %v1614_v41 = vpop.permute.xlu0 %1613 }
0x1585   :  { %v1715_v57 = vpop.permute.xlu1 %1714  ;;  %v1616_v58 = vmul.f32 %v2235_v50, %v1614_v41 }
0x1586   :  { %v1717_v59 = vmul.f32 %v2237_v48, %v1715_v57 }
0x1587   :  { %1618 = vrot.lane.b32.xlu0 %v1616_v58, %s2347_s24 }
0x1588   :  { %1719 = vrot.lane.b32.xlu1 %v1717_v59, %s2347_s24 }
0x15f9   :  { %v1619_v60 = vpop.permute.xlu0 %1618 }
0x15fa   :  { %v1720_v61 = vpop.permute.xlu1 %1719  ;;  %2086 = vmatmul.mubr.msk.f32.vlgmr.msra.gmra.mxu1 %vm300_vm2, %v1619_v60 }
0x15fb   :  { %2097 = vmatmul.mubr.msk.f32.vlgmr.msra.gmra.mxu0 %vm300_vm2, %v1720_v61  ;;  %2107 = vmatprep.mubr.msk.f32.mxu1 %vm2348_vm3, %v2345_v0 }
0x15fc   :  { %2100 = vmatpush3.msra.mxu1 %v1821_v21 }
0x15fd   :  { %2101 = vmatprep.subr.mxu1 %v2345_v0 }
0x15fe   :  { %2102 = vmatpush3.msra.mxu1 %v1820_v34 }
0x15ff   :  { %2103 = vmatprep.subr.mxu1 %v2345_v0 }
0x1600   :  { %2104 = vmatpush3.msra.mxu1 %v1819_v22 }
0x1601   :  { %2105 = vmatprep.subr.mxu1 %v2345_v0 }
0x1602   :  { %2106 = vmatpush3.msra.mxu1 %v1818_v23 }
0x16ba   :  { %v1688_v62 = vpop.f32.mrf.mxu1 }
0x16bb   :  { %v1789_v1 = vpop.f32.mrf.mxu0 }
0x16bc   :  { %v1790_v3 = vadd.f32 %v1789_v1, %v1688_v62  ;;  %v2087_v20 = vpop.f32.mrf.mxu1 }
0x16bd   :  { %v2098_v63 = vpop.f32.mrf.mxu0 }
0x16be   :  { %v1793_v5 = vadd.f32 %v2251_v4, %v1790_v3 }
0x16c0   :  { %2242 = vtanh.f32 %v1793_v5  ;;  %v1963_v7 = vmul.f32 -1.442695, %v1793_v5 }
0x16c2   :  { %2244 = vpow2.f32 %v1963_v7 }
0x16cd   :  { %v2243_v6 = vpop.eup %2242 }
0x16ce   :  { %1803 = vrot.lane.b32.xlu0 %v2243_v6, %s2346_s23 }
0x16cf   :  { %v2245_v8 = vpop.eup %2244 }
0x16d0   :  { %v1797_v9 = vadd.f32 1.0, %v2245_v8 }
0x16d2   :  { %2246 = vrcp.f32 %v1797_v9 }
0x16df   :  { %v2247_v10 = vpop.eup %2246 }
0x16e0   :  { %v1801_v17 = vmul.f32 %v2247_v10, %v1610_v36 }
0x1740   :  { %v1804_v11 = vpop.permute.xlu0 %1803 }
0x1741   :  { %v1806_v12 = vmul.f32 %v2247_v10, %v1804_v11 }
0x1743   :  { %1808 = vrot.lane.b32.xlu1 %v1806_v12, %s2347_s24 }
0x17b5   :  { %v1809_v18 = vpop.permute.xlu1 %1808 }
0x17b6   :  { %v1811_v19 = vadd.f32 %v1809_v18, %v1801_v17 }
0x17b8   :  { %2248 = vtanh.f32 %v1811_v19 }
0x17c5   :  { %v2249_v24 = vpop.eup %2248 }
0x17c6   :  { %1814 = vrot.lane.b32.xlu0 %v2249_v24, %s2346_s23 }
0x1838   :  { %v1815_v25 = vpop.permute.xlu0 %1814 }
0x1839   :  { %v1817_v26 = vmul.f32 %v2247_v10, %v1815_v25 }
0x183b   :  { %1830 = vrot.lane.b32.xlu1 %v1817_v26, %s2347_s24 }
0x18ad   :  { %v1831_v27 = vpop.permute.xlu1 %1830 }
0x18ae   :  { %2108 = vmatmul.mubr.msk.f32.vlgmr.msra.gmra.mxu1 %vm300_vm2, %v1831_v27 }
0x196e   :  { %v1900_v35 = vpop.f32.mrf.mxu1 }
0x196f   :  { %v1901_v0 = vadd.f32 %v1964_v28, %v1900_v35 }
0x1970   :  { %v2109_v37 = vpop.f32.mrf.mxu1 }
0x1971   :  { %1905 = vst.msk [vmem:[#allocation9] sm:$0xff] %vm1904_vm4, %v1901_v0 }
0x1972   :  { %2323 = shalt.err (!%p2320_p5)
}
0x1973   :  { %1915 = dma.vmem_to_hbm [thread:$0]  %s1913_s6, 128, %s2808_s8, [#allocation5]  }
0x1974   :  { %2336 = dma.done.wait [#allocation5], 128  }
0x1975   :  { %2337 = vsyncadd [#allocation5], 4294967168 }
0x1976   :  { %1919 = vsyncpa [#allocation4], 1 }
0x1977   :  { %1920 = vsyncpa [#allocation7], 1 }
0x1978   :  { %1921 = vsyncpa [#allocation5], 1 }

</bundles_post_ra>
